<compile_context>
chip_gen: v7x
topology: tpu7x:2x2x1
jax: 0.10.0
libtpu: 0.0.40
codegen_flags: <defaults>
</compile_context>

<pallas_src>
import math
import functools

import jax
import jax.numpy as jnp
from jax.experimental import pallas as pl
from jax.experimental.pallas import tpu as pltpu


# ----------------------------- configuration --------------------------------
# Mirrors opt.arch.siren.*
HIDDEN_FEATURES   = 32
HIDDEN_LAYERS     = 2
FIRST_OMEGA       = 30.0
HIDDEN_OMEGA      = 30.0
OUTERMOST_LINEAR  = True          # final layer is a plain Linear (no sine)
IN_FEATURES       = 2
OUT_FEATURES      = 3

LANE       = 128
MAX_TILE_N = 8192                 # fits every generation's scoped-VMEM default
                                  # (coords 64 KiB, out 96 KiB, (32,TN) f32
                                  #  temps ~1 MiB each -> few MiB total)


def _choose_tile_n(n):
    """Return (tile_n, n_padded).

    Small N  -> one lane-aligned tile (single grid step, no forced split).
    Large N  -> fixed MAX_TILE_N tile, N padded up to a tile multiple
                (waste <= TILE_N-1 points instead of shrinking the tile)."""
    n_lane = -(-n // LANE) * LANE
    if n_lane <= MAX_TILE_N:
        return n_lane, n_lane
    n_pad = -(-n // MAX_TILE_N) * MAX_TILE_N
    return MAX_TILE_N, n_pad


# --------------------------- fast bounded sine -------------------------------
_INV_PI = 0.3183098861837907      # 1/pi
_PI_HI  = 3.140625                # high part of pi, exactly representable (few bits)
_PI_MED = 9.676535897932796e-4    # pi - _PI_HI (residual, ~f32 exact for small k)

# degree-11 odd Taylor coefficients for sin(r), |r| <= pi/2 (max err ~6e-8)
_S3  = -1.0 / 6.0
_S5  =  1.0 / 120.0
_S7  = -1.0 / 5040.0
_S9  =  1.0 / 362880.0
_S11 = -1.0 / 39916800.0


def _fast_sin(x):
    """sin(x) for bounded |x| (pre-activations here satisfy |x| <~ 60).

    One-step Cody-Waite reduction mod pi with a split constant, then a
    degree-11 odd polynomial on [-pi/2, pi/2] and a (-1)^k sign.  All plain
    VPU mul/add/floor ops; ~3e-7 absolute error."""
    k = jnp.floor(x * _INV_PI + 0.5)            # nearest integer to x/pi
    r = x - k * _PI_HI                          # exact product for |k| < 2^16
    r = r - k * _PI_MED                         # r in ~[-pi/2, pi/2]
    parity = k - 2.0 * jnp.floor(0.5 * k)       # k mod 2 in {0., 1.}
    sign = 1.0 - 2.0 * parity                   # (-1)^k
    r2 = r * r
    p = _S11
    p = p * r2 + _S9
    p = p * r2 + _S7
    p = p * r2 + _S5
    p = p * r2 + _S3
    p = p * r2 + 1.0
    return sign * r * p


# ------------------------------- kernel -------------------------------------
def siren_kernel(coord_ref, *refs, hidden_layers, outermost_linear):
    """Fused SIREN MLP for one tile of points (points-in-lanes layout).

    coord_ref: (2, TILE_N)
    refs: w0 (H,2), b0 (H,1), [w_i (H,H), b_i (H,1)] * hidden_layers,
          w_f (3,H), b_f (3,1), out_ref (3, TILE_N)
    Omega has already been folded into the sine-layer weights/biases.
    """
    out_ref = refs[-1]
    p = refs[:-1]

    x = coord_ref[...]                                             # (2, TN)

    # first sine layer: K=2 contraction as two VPU broadcast FMAs (skip MXU).
    w0 = p[0][...]                                                 # (H, 2)
    b0 = p[1][...]                                                 # (H, 1)
    pre = w0[:, 0:1] * x[0:1, :] + w0[:, 1:2] * x[1:2, :] + b0     # (H, TN)
    h = _fast_sin(pre)

    # hidden sine layers: lane-dense (H, TN) matmuls on the MXU.
    for i in range(hidden_layers):
        w = p[2 + 2 * i][...]                                      # (H, H)
        b = p[3 + 2 * i][...]                                      # (H, 1)
        z = jnp.dot(w, h, preferred_element_type=jnp.float32,
                    precision=jax.lax.Precision.HIGHEST) + b
        h = _fast_sin(z)

    # final layer
    wf = p[2 + 2 * hidden_layers][...]                             # (3, H)
    bf = p[3 + 2 * hidden_layers][...]                             # (3, 1)
    y = jnp.dot(wf, h, preferred_element_type=jnp.float32,
                precision=jax.lax.Precision.HIGHEST) + bf
    if not outermost_linear:
        y = _fast_sin(y)      # omega already folded into wf/bf in that case
    out_ref[...] = y.astype(out_ref.dtype)


# ------------------------------ wrapper --------------------------------------
def _fold_omegas(params):
    """Fold omega into sine-layer weights/biases (W' = omega*W, b' = omega*b)."""
    n_layers = HIDDEN_LAYERS + 2
    folded = []
    for l in range(n_layers):
        w, b = params[2 * l], params[2 * l + 1]
        if l == 0:
            omega = FIRST_OMEGA
        elif l < n_layers - 1 or not OUTERMOST_LINEAR:
            omega = HIDDEN_OMEGA
        else:
            omega = 1.0
        folded.append(w * omega)
        folded.append(b * omega)
    return folded


def neural_image_function(coord_2d, params):
    """coord_2d: (N, 2) float32 -> (N, 3) float32.

    params (PyTorch layout): [W0 (H,2), b0 (H,1), W1 (H,H), b1 (H,1), ...,
                              Wf (3,H), bf (3,1)].
    """
    N, fin = coord_2d.shape
    assert fin == IN_FEATURES

    tile_n, n_pad = _choose_tile_n(N)

    # Points-in-lanes layout: one transpose (and zero-pad up to a tile
    # multiple) outside the kernel; one-time XLA ops, not per-grid-step work.
    # Padded (zero) columns run through the network and are sliced off below.
    coords_t = coord_2d.T                                          # (2, N)
    if n_pad != N:
        coords_t = jnp.pad(coords_t, ((0, 0), (0, n_pad - N)))

    grid = (n_pad // tile_n,)

    folded = _fold_omegas(params)

    kernel = functools.partial(
        siren_kernel,
        hidden_layers=HIDDEN_LAYERS,
        outermost_linear=OUTERMOST_LINEAR,
    )

    # coords tiled over the grid along lanes; every weight/bias replicated
    # (full block, constant index map => DMA'd once).
    in_specs = [pl.BlockSpec((IN_FEATURES, tile_n), lambda i: (0, i))]
    for prm in folded:
        # bind ndim explicitly — do NOT rely on a late-bound loop variable.
        in_specs.append(pl.BlockSpec(prm.shape, lambda i, nd=prm.ndim: (0,) * nd))

    out_spec = pl.BlockSpec((OUT_FEATURES, tile_n), lambda i: (0, i))

    out_t = pl.pallas_call(
        kernel,
        out_shape=jax.ShapeDtypeStruct((OUT_FEATURES, n_pad), jnp.float32),
        grid_spec=pltpu.PrefetchScalarGridSpec(
            num_scalar_prefetch=0,
            grid=grid,
            in_specs=in_specs,
            out_specs=out_spec,
        ),
        compiler_params=pltpu.CompilerParams(
            dimension_semantics=("parallel",)),
    )(coords_t, *folded)

    return out_t[:, :N].T                                          # (N, 3)


# ------------------------- parameter initialization ---------------------------
def init_params(key):
    """Deterministic init matching the PyTorch module's init semantics.

    Weights are stored exactly like PyTorch nn.Linear: (out_features, in_features).
    Biases use nn.Linear's default uniform(-1/sqrt(in), 1/sqrt(in)), stored as
    (out_features, 1) columns for lane-broadcast in the kernel.
    """
    params = []

    def uniform(k, shape, lo, hi):
        return jax.random.uniform(k, shape, jnp.float32, lo, hi)

    keys = jax.random.split(key, 2 * (HIDDEN_LAYERS + 2))
    ki = iter(range(len(keys)))

    # first sine layer: 2 -> H
    bnd_w = 1.0 / IN_FEATURES
    bnd_b = 1.0 / math.sqrt(IN_FEATURES)
    params.append(uniform(keys[next(ki)], (HIDDEN_FEATURES, IN_FEATURES), -bnd_w, bnd_w))
    params.append(uniform(keys[next(ki)], (HIDDEN_FEATURES, 1), -bnd_b, bnd_b))

    # hidden sine layers: H -> H
    bnd_w = math.sqrt(6.0 / HIDDEN_FEATURES) / HIDDEN_OMEGA
    bnd_b = 1.0 / math.sqrt(HIDDEN_FEATURES)
    for _ in range(HIDDEN_LAYERS):
        params.append(uniform(keys[next(ki)], (HIDDEN_FEATURES, HIDDEN_FEATURES), -bnd_w, bnd_w))
        params.append(uniform(keys[next(ki)], (HIDDEN_FEATURES, 1), -bnd_b, bnd_b))

    # final linear: H -> 3
    bnd_w = math.sqrt(6.0 / HIDDEN_FEATURES) / HIDDEN_OMEGA
    bnd_b = 1.0 / math.sqrt(HIDDEN_FEATURES)
    params.append(uniform(keys[next(ki)], (OUT_FEATURES, HIDDEN_FEATURES), -bnd_w, bnd_w))
    params.append(uniform(keys[next(ki)], (OUT_FEATURES, 1), -bnd_b, bnd_b))

    return params


# ------------------------------ reference ------------------------------------
def reference_forward(coord_2d, params):
    """Pure-JAX reference with the module's exact semantics: sin(omega * Linear(x))."""
    n_layers = HIDDEN_LAYERS + 2
    h = coord_2d
    for l in range(n_layers):
        w, b = params[2 * l], params[2 * l + 1]
        h = jnp.dot(h, w.T, precision=jax.lax.Precision.HIGHEST) + b[:, 0]
        if l == 0:
            h = jnp.sin(FIRST_OMEGA * h)
        elif l < n_layers - 1 or not OUTERMOST_LINEAR:
            h = jnp.sin(HIDDEN_OMEGA * h)
    return h


# -------------------------------- main ----------------------------------------
if __name__ == "__main__":
    key = jax.random.PRNGKey(0)
    k_param, k_coord = jax.random.split(key)

    params = init_params(k_param)

    # Small image: 16x16 pixel grid -> 256 coordinates in [-1, 1]^2.
    N = 256
    coords = jax.random.uniform(k_coord, (N, IN_FEATURES), jnp.float32, -1.0, 1.0)

    out = neural_image_function(coords, params)
    out = jax.block_until_ready(out)

    ref = reference_forward(coords, params)
    assert out.shape == (N, OUT_FEATURES)
    assert jnp.allclose(out, ref, atol=5e-5, rtol=5e-5), "mismatch vs reference"

    print("KERNEL_OK")
</pallas_src>

<mosaic_0001>
module attributes {stable_mosaic.version = 11 : i64} {
  func.func @siren_kernel(%arg0: i32, %arg1: memref<2x256xf32, #tpu.memory_space<vmem>>, %arg2: memref<32x2xf32, #tpu.memory_space<vmem>>, %arg3: memref<32x1xf32, #tpu.memory_space<vmem>>, %arg4: memref<32x32xf32, #tpu.memory_space<vmem>>, %arg5: memref<32x1xf32, #tpu.memory_space<vmem>>, %arg6: memref<32x32xf32, #tpu.memory_space<vmem>>, %arg7: memref<32x1xf32, #tpu.memory_space<vmem>>, %arg8: memref<3x32xf32, #tpu.memory_space<vmem>>, %arg9: memref<3x1xf32, #tpu.memory_space<vmem>>, %arg10: memref<3x256xf32, #tpu.memory_space<vmem>>) attributes {dimension_semantics = [#tpu.dimension_semantics<parallel>], iteration_bounds = array<i64: 1>, scalar_prefetch = 0 : i64, scratch_operands = 0 : i64, tpu.core_type = #tpu.core_type<tc>, window_params = [{transform_indices = @transform_0, window_bounds = array<i64: 2, 256>}, {pipeline_mode = #tpu.pipeline_mode<synchronous>, transform_indices = @transform_1, window_bounds = array<i64: 32, 2>}, {pipeline_mode = #tpu.pipeline_mode<synchronous>, transform_indices = @transform_2, window_bounds = array<i64: 32, 1>}, {pipeline_mode = #tpu.pipeline_mode<synchronous>, transform_indices = @transform_3, window_bounds = array<i64: 32, 32>}, {pipeline_mode = #tpu.pipeline_mode<synchronous>, transform_indices = @transform_4, window_bounds = array<i64: 32, 1>}, {pipeline_mode = #tpu.pipeline_mode<synchronous>, transform_indices = @transform_5, window_bounds = array<i64: 32, 32>}, {pipeline_mode = #tpu.pipeline_mode<synchronous>, transform_indices = @transform_6, window_bounds = array<i64: 32, 1>}, {pipeline_mode = #tpu.pipeline_mode<synchronous>, transform_indices = @transform_7, window_bounds = array<i64: 3, 32>}, {pipeline_mode = #tpu.pipeline_mode<synchronous>, transform_indices = @transform_8, window_bounds = array<i64: 3, 1>}, {transform_indices = @transform_9, window_bounds = array<i64: 3, 256>}]} {
    %c0 = arith.constant 0 : index
    %c0_0 = arith.constant 0 : index
    %0 = vector.load %arg1[%c0, %c0_0] : memref<2x256xf32, #tpu.memory_space<vmem>>, vector<2x256xf32>
    %c0_1 = arith.constant 0 : index
    %c0_2 = arith.constant 0 : index
    %1 = vector.load %arg2[%c0_1, %c0_2] : memref<32x2xf32, #tpu.memory_space<vmem>>, vector<32x2xf32>
    %c0_3 = arith.constant 0 : index
    %c0_4 = arith.constant 0 : index
    %2 = vector.load %arg3[%c0_3, %c0_4] : memref<32x1xf32, #tpu.memory_space<vmem>>, vector<32x1xf32>
    %3 = vector.extract_strided_slice %1 {offsets = [0, 0], sizes = [32, 1], strides = [1, 1]} : vector<32x2xf32> to vector<32x1xf32>
    %4 = vector.extract_strided_slice %0 {offsets = [0, 0], sizes = [1, 256], strides = [1, 1]} : vector<2x256xf32> to vector<1x256xf32>
    %5 = vector.broadcast %3 : vector<32x1xf32> to vector<32x256xf32>
    %6 = vector.broadcast %4 : vector<1x256xf32> to vector<32x256xf32>
    %7 = arith.mulf %5, %6 : vector<32x256xf32>
    %8 = vector.extract_strided_slice %1 {offsets = [0, 1], sizes = [32, 1], strides = [1, 1]} : vector<32x2xf32> to vector<32x1xf32>
    %9 = vector.extract_strided_slice %0 {offsets = [1, 0], sizes = [1, 256], strides = [1, 1]} : vector<2x256xf32> to vector<1x256xf32>
    %10 = vector.broadcast %8 : vector<32x1xf32> to vector<32x256xf32>
    %11 = vector.broadcast %9 : vector<1x256xf32> to vector<32x256xf32>
    %12 = arith.mulf %10, %11 : vector<32x256xf32>
    %13 = arith.addf %7, %12 : vector<32x256xf32>
    %14 = vector.broadcast %2 : vector<32x1xf32> to vector<32x256xf32>
    %15 = arith.addf %13, %14 : vector<32x256xf32>
    %cst = arith.constant 0.318309873 : f32
    %16 = vector.broadcast %cst : f32 to vector<32x256xf32>
    %17 = arith.mulf %15, %16 : vector<32x256xf32>
    %cst_5 = arith.constant 5.000000e-01 : f32
    %18 = vector.broadcast %cst_5 : f32 to vector<32x256xf32>
    %19 = arith.addf %17, %18 : vector<32x256xf32>
    %20 = math.floor %19 : vector<32x256xf32>
    %cst_6 = arith.constant 3.140625 : f32
    %21 = vector.broadcast %cst_6 : f32 to vector<32x256xf32>
    %22 = arith.mulf %20, %21 : vector<32x256xf32>
    %23 = arith.subf %15, %22 : vector<32x256xf32>
    %cst_7 = arith.constant 9.67653584E-4 : f32
    %24 = vector.broadcast %cst_7 : f32 to vector<32x256xf32>
    %25 = arith.mulf %20, %24 : vector<32x256xf32>
    %26 = arith.subf %23, %25 : vector<32x256xf32>
    %cst_8 = arith.constant 5.000000e-01 : f32
    %27 = vector.broadcast %cst_8 : f32 to vector<32x256xf32>
    %28 = arith.mulf %27, %20 : vector<32x256xf32>
    %29 = math.floor %28 : vector<32x256xf32>
    %cst_9 = arith.constant 2.000000e+00 : f32
    %30 = vector.broadcast %cst_9 : f32 to vector<32x256xf32>
    %31 = arith.mulf %30, %29 : vector<32x256xf32>
    %32 = arith.subf %20, %31 : vector<32x256xf32>
    %cst_10 = arith.constant 2.000000e+00 : f32
    %33 = vector.broadcast %cst_10 : f32 to vector<32x256xf32>
    %34 = arith.mulf %33, %32 : vector<32x256xf32>
    %cst_11 = arith.constant 1.000000e+00 : f32
    %35 = vector.broadcast %cst_11 : f32 to vector<32x256xf32>
    %36 = arith.subf %35, %34 : vector<32x256xf32>
    %37 = arith.mulf %26, %26 : vector<32x256xf32>
    %cst_12 = arith.constant -2.50521079E-8 : f32
    %38 = vector.broadcast %cst_12 : f32 to vector<32x256xf32>
    %39 = arith.mulf %38, %37 : vector<32x256xf32>
    %cst_13 = arith.constant 2.75573188E-6 : f32
    %40 = vector.broadcast %cst_13 : f32 to vector<32x256xf32>
    %41 = arith.addf %39, %40 : vector<32x256xf32>
    %42 = arith.mulf %41, %37 : vector<32x256xf32>
    %cst_14 = arith.constant -1.98412701E-4 : f32
    %43 = vector.broadcast %cst_14 : f32 to vector<32x256xf32>
    %44 = arith.addf %42, %43 : vector<32x256xf32>
    %45 = arith.mulf %44, %37 : vector<32x256xf32>
    %cst_15 = arith.constant 0.00833333377 : f32
    %46 = vector.broadcast %cst_15 : f32 to vector<32x256xf32>
    %47 = arith.addf %45, %46 : vector<32x256xf32>
    %48 = arith.mulf %47, %37 : vector<32x256xf32>
    %cst_16 = arith.constant -0.166666672 : f32
    %49 = vector.broadcast %cst_16 : f32 to vector<32x256xf32>
    %50 = arith.addf %48, %49 : vector<32x256xf32>
    %51 = arith.mulf %50, %37 : vector<32x256xf32>
    %cst_17 = arith.constant 1.000000e+00 : f32
    %52 = vector.broadcast %cst_17 : f32 to vector<32x256xf32>
    %53 = arith.addf %51, %52 : vector<32x256xf32>
    %54 = arith.mulf %36, %26 : vector<32x256xf32>
    %55 = arith.mulf %54, %53 : vector<32x256xf32>
    %c0_18 = arith.constant 0 : index
    %c0_19 = arith.constant 0 : index
    %56 = vector.load %arg4[%c0_18, %c0_19] : memref<32x32xf32, #tpu.memory_space<vmem>>, vector<32x32xf32>
    %c0_20 = arith.constant 0 : index
    %c0_21 = arith.constant 0 : index
    %57 = vector.load %arg5[%c0_20, %c0_21] : memref<32x1xf32, #tpu.memory_space<vmem>>, vector<32x1xf32>
    %cst_22 = arith.constant dense<0.000000e+00> : vector<32x256xf32>
    %58 = tpu.matmul %56, %55, %cst_22 {dimension_numbers = #tpu.dot_dimension_numbers<[1], [0], [0], [1], [0, 0, 1, 1], [], []>, precision = #tpu.contract_precision<fp32>} : vector<32x32xf32>, vector<32x256xf32>, vector<32x256xf32> -> vector<32x256xf32>
    %59 = vector.broadcast %57 : vector<32x1xf32> to vector<32x256xf32>
    %60 = arith.addf %58, %59 : vector<32x256xf32>
    %cst_23 = arith.constant 0.318309873 : f32
    %61 = vector.broadcast %cst_23 : f32 to vector<32x256xf32>
    %62 = arith.mulf %60, %61 : vector<32x256xf32>
    %cst_24 = arith.constant 5.000000e-01 : f32
    %63 = vector.broadcast %cst_24 : f32 to vector<32x256xf32>
    %64 = arith.addf %62, %63 : vector<32x256xf32>
    %65 = math.floor %64 : vector<32x256xf32>
    %cst_25 = arith.constant 3.140625 : f32
    %66 = vector.broadcast %cst_25 : f32 to vector<32x256xf32>
    %67 = arith.mulf %65, %66 : vector<32x256xf32>
    %68 = arith.subf %60, %67 : vector<32x256xf32>
    %cst_26 = arith.constant 9.67653584E-4 : f32
    %69 = vector.broadcast %cst_26 : f32 to vector<32x256xf32>
    %70 = arith.mulf %65, %69 : vector<32x256xf32>
    %71 = arith.subf %68, %70 : vector<32x256xf32>
    %cst_27 = arith.constant 5.000000e-01 : f32
    %72 = vector.broadcast %cst_27 : f32 to vector<32x256xf32>
    %73 = arith.mulf %72, %65 : vector<32x256xf32>
    %74 = math.floor %73 : vector<32x256xf32>
    %cst_28 = arith.constant 2.000000e+00 : f32
    %75 = vector.broadcast %cst_28 : f32 to vector<32x256xf32>
    %76 = arith.mulf %75, %74 : vector<32x256xf32>
    %77 = arith.subf %65, %76 : vector<32x256xf32>
    %cst_29 = arith.constant 2.000000e+00 : f32
    %78 = vector.broadcast %cst_29 : f32 to vector<32x256xf32>
    %79 = arith.mulf %78, %77 : vector<32x256xf32>
    %cst_30 = arith.constant 1.000000e+00 : f32
    %80 = vector.broadcast %cst_30 : f32 to vector<32x256xf32>
    %81 = arith.subf %80, %79 : vector<32x256xf32>
    %82 = arith.mulf %71, %71 : vector<32x256xf32>
    %cst_31 = arith.constant -2.50521079E-8 : f32
    %83 = vector.broadcast %cst_31 : f32 to vector<32x256xf32>
    %84 = arith.mulf %83, %82 : vector<32x256xf32>
    %cst_32 = arith.constant 2.75573188E-6 : f32
    %85 = vector.broadcast %cst_32 : f32 to vector<32x256xf32>
    %86 = arith.addf %84, %85 : vector<32x256xf32>
    %87 = arith.mulf %86, %82 : vector<32x256xf32>
    %cst_33 = arith.constant -1.98412701E-4 : f32
    %88 = vector.broadcast %cst_33 : f32 to vector<32x256xf32>
    %89 = arith.addf %87, %88 : vector<32x256xf32>
    %90 = arith.mulf %89, %82 : vector<32x256xf32>
    %cst_34 = arith.constant 0.00833333377 : f32
    %91 = vector.broadcast %cst_34 : f32 to vector<32x256xf32>
    %92 = arith.addf %90, %91 : vector<32x256xf32>
    %93 = arith.mulf %92, %82 : vector<32x256xf32>
    %cst_35 = arith.constant -0.166666672 : f32
    %94 = vector.broadcast %cst_35 : f32 to vector<32x256xf32>
    %95 = arith.addf %93, %94 : vector<32x256xf32>
    %96 = arith.mulf %95, %82 : vector<32x256xf32>
    %cst_36 = arith.constant 1.000000e+00 : f32
    %97 = vector.broadcast %cst_36 : f32 to vector<32x256xf32>
    %98 = arith.addf %96, %97 : vector<32x256xf32>
    %99 = arith.mulf %81, %71 : vector<32x256xf32>
    %100 = arith.mulf %99, %98 : vector<32x256xf32>
    %c0_37 = arith.constant 0 : index
    %c0_38 = arith.constant 0 : index
    %101 = vector.load %arg6[%c0_37, %c0_38] : memref<32x32xf32, #tpu.memory_space<vmem>>, vector<32x32xf32>
    %c0_39 = arith.constant 0 : index
    %c0_40 = arith.constant 0 : index
    %102 = vector.load %arg7[%c0_39, %c0_40] : memref<32x1xf32, #tpu.memory_space<vmem>>, vector<32x1xf32>
    %cst_41 = arith.constant dense<0.000000e+00> : vector<32x256xf32>
    %103 = tpu.matmul %101, %100, %cst_41 {dimension_numbers = #tpu.dot_dimension_numbers<[1], [0], [0], [1], [0, 0, 1, 1], [], []>, precision = #tpu.contract_precision<fp32>} : vector<32x32xf32>, vector<32x256xf32>, vector<32x256xf32> -> vector<32x256xf32>
    %104 = vector.broadcast %102 : vector<32x1xf32> to vector<32x256xf32>
    %105 = arith.addf %103, %104 : vector<32x256xf32>
    %cst_42 = arith.constant 0.318309873 : f32
    %106 = vector.broadcast %cst_42 : f32 to vector<32x256xf32>
    %107 = arith.mulf %105, %106 : vector<32x256xf32>
    %cst_43 = arith.constant 5.000000e-01 : f32
    %108 = vector.broadcast %cst_43 : f32 to vector<32x256xf32>
    %109 = arith.addf %107, %108 : vector<32x256xf32>
    %110 = math.floor %109 : vector<32x256xf32>
    %cst_44 = arith.constant 3.140625 : f32
    %111 = vector.broadcast %cst_44 : f32 to vector<32x256xf32>
    %112 = arith.mulf %110, %111 : vector<32x256xf32>
    %113 = arith.subf %105, %112 : vector<32x256xf32>
    %cst_45 = arith.constant 9.67653584E-4 : f32
    %114 = vector.broadcast %cst_45 : f32 to vector<32x256xf32>
    %115 = arith.mulf %110, %114 : vector<32x256xf32>
    %116 = arith.subf %113, %115 : vector<32x256xf32>
    %cst_46 = arith.constant 5.000000e-01 : f32
    %117 = vector.broadcast %cst_46 : f32 to vector<32x256xf32>
    %118 = arith.mulf %117, %110 : vector<32x256xf32>
    %119 = math.floor %118 : vector<32x256xf32>
    %cst_47 = arith.constant 2.000000e+00 : f32
    %120 = vector.broadcast %cst_47 : f32 to vector<32x256xf32>
    %121 = arith.mulf %120, %119 : vector<32x256xf32>
    %122 = arith.subf %110, %121 : vector<32x256xf32>
    %cst_48 = arith.constant 2.000000e+00 : f32
    %123 = vector.broadcast %cst_48 : f32 to vector<32x256xf32>
    %124 = arith.mulf %123, %122 : vector<32x256xf32>
    %cst_49 = arith.constant 1.000000e+00 : f32
    %125 = vector.broadcast %cst_49 : f32 to vector<32x256xf32>
    %126 = arith.subf %125, %124 : vector<32x256xf32>
    %127 = arith.mulf %116, %116 : vector<32x256xf32>
    %cst_50 = arith.constant -2.50521079E-8 : f32
    %128 = vector.broadcast %cst_50 : f32 to vector<32x256xf32>
    %129 = arith.mulf %128, %127 : vector<32x256xf32>
    %cst_51 = arith.constant 2.75573188E-6 : f32
    %130 = vector.broadcast %cst_51 : f32 to vector<32x256xf32>
    %131 = arith.addf %129, %130 : vector<32x256xf32>
    %132 = arith.mulf %131, %127 : vector<32x256xf32>
    %cst_52 = arith.constant -1.98412701E-4 : f32
    %133 = vector.broadcast %cst_52 : f32 to vector<32x256xf32>
    %134 = arith.addf %132, %133 : vector<32x256xf32>
    %135 = arith.mulf %134, %127 : vector<32x256xf32>
    %cst_53 = arith.constant 0.00833333377 : f32
    %136 = vector.broadcast %cst_53 : f32 to vector<32x256xf32>
    %137 = arith.addf %135, %136 : vector<32x256xf32>
    %138 = arith.mulf %137, %127 : vector<32x256xf32>
    %cst_54 = arith.constant -0.166666672 : f32
    %139 = vector.broadcast %cst_54 : f32 to vector<32x256xf32>
    %140 = arith.addf %138, %139 : vector<32x256xf32>
    %141 = arith.mulf %140, %127 : vector<32x256xf32>
    %cst_55 = arith.constant 1.000000e+00 : f32
    %142 = vector.broadcast %cst_55 : f32 to vector<32x256xf32>
    %143 = arith.addf %141, %142 : vector<32x256xf32>
    %144 = arith.mulf %126, %116 : vector<32x256xf32>
    %145 = arith.mulf %144, %143 : vector<32x256xf32>
    %c0_56 = arith.constant 0 : index
    %c0_57 = arith.constant 0 : index
    %146 = vector.load %arg8[%c0_56, %c0_57] : memref<3x32xf32, #tpu.memory_space<vmem>>, vector<3x32xf32>
    %c0_58 = arith.constant 0 : index
    %c0_59 = arith.constant 0 : index
    %147 = vector.load %arg9[%c0_58, %c0_59] : memref<3x1xf32, #tpu.memory_space<vmem>>, vector<3x1xf32>
    %cst_60 = arith.constant dense<0.000000e+00> : vector<3x256xf32>
    %148 = tpu.matmul %146, %145, %cst_60 {dimension_numbers = #tpu.dot_dimension_numbers<[1], [0], [0], [1], [0, 0, 1, 1], [], []>, precision = #tpu.contract_precision<fp32>} : vector<3x32xf32>, vector<32x256xf32>, vector<3x256xf32> -> vector<3x256xf32>
    %149 = vector.broadcast %147 : vector<3x1xf32> to vector<3x256xf32>
    %150 = arith.addf %148, %149 : vector<3x256xf32>
    %c0_61 = arith.constant 0 : index
    %c0_62 = arith.constant 0 : index
    %151 = vector.load %arg10[%c0_61, %c0_62] : memref<3x256xf32, #tpu.memory_space<vmem>>, vector<3x256xf32>
    tpu.vector_store %arg10[%c0_61, %c0_62], %150 {strides = array<i32>} : memref<3x256xf32, #tpu.memory_space<vmem>>, vector<3x256xf32>,
    return
  }
  func.func @transform_0(%arg0: i32) -> (i32, i32) {
    %c0_i32 = arith.constant 0 : i32
    %c0_i32_0 = arith.constant 0 : i32
    return %c0_i32, %arg0 : i32, i32
  }
  func.func @transform_1(%arg0: i32) -> (i32, i32) {
    %c0_i32 = arith.constant 0 : i32
    %c0_i32_0 = arith.constant 0 : i32
    %c0_i32_1 = arith.constant 0 : i32
    return %c0_i32, %c0_i32_0 : i32, i32
  }
  func.func @transform_2(%arg0: i32) -> (i32, i32) {
    %c0_i32 = arith.constant 0 : i32
    %c0_i32_0 = arith.constant 0 : i32
    %c0_i32_1 = arith.constant 0 : i32
    return %c0_i32, %c0_i32_0 : i32, i32
  }
  func.func @transform_3(%arg0: i32) -> (i32, i32) {
    %c0_i32 = arith.constant 0 : i32
    %c0_i32_0 = arith.constant 0 : i32
    %c0_i32_1 = arith.constant 0 : i32
    return %c0_i32, %c0_i32_0 : i32, i32
  }
  func.func @transform_4(%arg0: i32) -> (i32, i32) {
    %c0_i32 = arith.constant 0 : i32
    %c0_i32_0 = arith.constant 0 : i32
    %c0_i32_1 = arith.constant 0 : i32
    return %c0_i32, %c0_i32_0 : i32, i32
  }
  func.func @transform_5(%arg0: i32) -> (i32, i32) {
    %c0_i32 = arith.constant 0 : i32
    %c0_i32_0 = arith.constant 0 : i32
    %c0_i32_1 = arith.constant 0 : i32
    return %c0_i32, %c0_i32_0 : i32, i32
  }
  func.func @transform_6(%arg0: i32) -> (i32, i32) {
    %c0_i32 = arith.constant 0 : i32
    %c0_i32_0 = arith.constant 0 : i32
    %c0_i32_1 = arith.constant 0 : i32
    return %c0_i32, %c0_i32_0 : i32, i32
  }
  func.func @transform_7(%arg0: i32) -> (i32, i32) {
    %c0_i32 = arith.constant 0 : i32
    %c0_i32_0 = arith.constant 0 : i32
    %c0_i32_1 = arith.constant 0 : i32
    return %c0_i32, %c0_i32_0 : i32, i32
  }
  func.func @transform_8(%arg0: i32) -> (i32, i32) {
    %c0_i32 = arith.constant 0 : i32
    %c0_i32_0 = arith.constant 0 : i32
    %c0_i32_1 = arith.constant 0 : i32
    return %c0_i32, %c0_i32_0 : i32, i32
  }
  func.func @transform_9(%arg0: i32) -> (i32, i32) {
    %c0_i32 = arith.constant 0 : i32
    %c0_i32_0 = arith.constant 0 : i32
    return %c0_i32, %arg0 : i32, i32
  }
}

</mosaic_0001>

<bundles_post_ra>
// kernel: tpu_custom_call.1
= control target key start
LH: loop header
LB: loop body
LE: loop exit
PB: predicated region body
PF: predicated region fallthrough
CT: control target
= control target key end

     0   :  { %v3110_v2 = vmov 1   ;;  %v3111_v4 = vmov 0   ;;  %s3962_s0 = inlined_call_operand.vmem [shape: f32[2,256], index: 0, kind: input, shape index: {}]   ;;  %s3963_s1 = inlined_call_operand.vmem [shape: f32[32,2], index: 1, kind: input, shape index: {}]   ;;  %s3964_s2 = inlined_call_operand.vmem [shape: f32[32,1], index: 2, kind: input, shape index: {}]   ;;  %s3965_s3 = inlined_call_operand.vmem [shape: f32[32,32], index: 3, kind: input, shape index: {}]   ;;  %s3966_s4 = inlined_call_operand.vmem [shape: f32[32,1], index: 4, kind: input, shape index: {}]   ;;  %s3967_s5 = inlined_call_operand.vmem [shape: f32[32,32], index: 5, kind: input, shape index: {}]   ;;  %s3968_s6 = inlined_call_operand.vmem [shape: f32[32,1], index: 6, kind: input, shape index: {}]   ;;  %s3969_s7 = inlined_call_operand.vmem [shape: f32[3,32], index: 7, kind: input, shape index: {}]   ;;  %s3970_s8 = inlined_call_operand.vmem [shape: f32[3,1], index: 8, kind: input, shape index: {}]   ;;  %s3971_s9 = inlined_call_operand.hbm [shape: f32[3,256], index: 9, kind: output, shape index: {}]  }
   0x1   :  { %v36_v0 = vld [vmem:[%s3963_s1 + $0x10] sm:$0xff]  ;;  %v34_v1 = vld [vmem:[%s3963_s1] sm:$0xff]  ;;  %3082 = vset.pattern.permute.xlu0 %v3110_v2  ;;  %3080 = vset.pattern.permute.xlu1 %v3110_v2  ;;  %v35_v3 = vld [vmem:[%s3963_s1 + $0x8] sm:$0xff] }
   0x2   :  { %98 = vperm.xlu0 %3082, %v36_v0   ;;  %90 = vperm.xlu1 %3080, %v34_v1  }
   0x6   :  { %3083 = vset.pattern.permute.xlu0 %v3111_v4  ;;  %94 = vperm.xlu1 %3080, %v35_v3  }
   0x7   :  { %14 = vsyncpa [#allocation3], 0  ;;  %44 = vperm.xlu0 %3083, %v34_v1   ;;  %v37_v5 = vld [vmem:[%s3963_s1 + $0x18] sm:$0xff]  ;;  %v39_v6 = vld [vmem:[%s3964_s2 + $0x8] sm:$0xff]  ;;  %v3112_v19 = vmov 0.0   ;;  %v63_v20 = vlaneseq  ;;  %vm403_vm0 = vcmask 261120  }
   0x8   :  { %v38_v7 = vld [vmem:[%s3964_s2] sm:$0xff]  ;;  %v40_v9 = vld [vmem:[%s3964_s2 + $0x10] sm:$0xff]  ;;  %v41_v11 = vld [vmem:[%s3964_s2 + $0x18] sm:$0xff]  ;;  %488 = vmatprep.mubr.f32.mxu1 %v3112_v19  ;;  %637 = vmatprep.mubr.f32.mxu0 %v3112_v19 }
   0x9   :  { %v379_v8 = vld [vmem:[%s3966_s4] sm:$0xff]  ;;  %v381_v10 = vld [vmem:[%s3966_s4 + $0x10] sm:$0xff]  ;;  %v380_v13 = vld [vmem:[%s3966_s4 + $0x8] sm:$0xff]  ;;  %v64_v21 = vshrl.u32 %v63_v20, 7 }
   0xa   :  { %3081 = vset.pattern.permute.xlu1 %v3111_v4  ;;  %v1318_v12 = vld [vmem:[%s3968_s6] sm:$0xff]  ;;  %v1320_v14 = vld [vmem:[%s3968_s6 + $0x10] sm:$0xff]  ;;  %v382_v15 = vld [vmem:[%s3966_s4 + $0x18] sm:$0xff] }
   0xb   :  { %49 = vperm.xlu0 %3083, %v35_v3   ;;  %59 = vperm.xlu1 %3081, %v37_v5   ;;  %v2253_v16 = vld [vmem:[%s3970_s8] sm:$0x7]  ;;  %v1319_v17 = vld [vmem:[%s3968_s6 + $0x8] sm:$0xff]  ;;  %v1321_v18 = vld [vmem:[%s3968_s6 + $0x18] sm:$0xff]  ;;  %v65_v24 = vsub.s32 0, %v64_v21  ;;  %v69_v25 = vsub.s32 2, %v64_v21 }
   0xc   :  { %v375_v26 = vld [vmem:[%s3965_s3] sm:$0xff]  ;;  %v107_v27 = vsub.s32 1, %v64_v21  ;;  %v111_v28 = vsub.s32 3, %v64_v21  ;;  %v376_v42 = vld [vmem:[%s3965_s3 + $0x8] sm:$0xff] }
   0xd   :  { %v33_v30 = vld [vmem:[%s3962_s0] sm:$0xf]  ;;  %v405_v34 = vsel %vm403_vm0, %v375_v26, 0  ;;  %v408_v49 = vsel %vm403_vm0, %v376_v42, 0 }
   0xe   :  { %v66_v32 = vrot.slane %v33_v30, %v65_v24  ;;  %v70_v33 = vrot.slane %v33_v30, %v69_v25  ;;  %v108_v35 = vrot.slane %v33_v30, %v107_v27  ;;  %v112_v36 = vrot.slane %v33_v30, %v111_v28 }
   0xf   :  { %54 = vperm.xlu0 %3083, %v36_v0   ;;  %3084 = vset.pattern.permute.xlu1 %v3110_v2  ;;  %v3224_v39 = vand.u32 4294901760, %v405_v34  ;;  %v3234_v61 = vand.u32 4294901760, %v408_v49 }
  0x10   :  { %102 = vperm.xlu1 %3084, %v37_v5   ;;  %v76_v40 = vrot.slane %v66_v32, %v65_v24  ;;  %v80_v41 = vrot.slane %v70_v33, %v65_v24  ;;  %v118_v43 = vrot.slane %v108_v35, %v107_v27  ;;  %v122_v44 = vrot.slane %v112_v36, %v107_v27 }
  0x11   :  { %v3230_v48 = vsub.f32 %v405_v34, %v3224_v39 }
  0x13   :  { %146 = vperm.xlu0 %3083, %v39_v6   ;;  %v491_v60 = vand.u32 4294901760, %v3230_v48 }
  0x14   :  { %3085 = vset.pattern.permute.xlu1 %v3111_v4 }
  0x15   :  { %141 = vperm.xlu1 %3085, %v38_v7  }
  0x17   :  { %385 = vperm.xlu0 %3083, %v379_v8  }
  0x19   :  { %151 = vperm.xlu1 %3085, %v40_v9   ;;  %v377_v9 = vld [vmem:[%s3965_s3 + $0x10] sm:$0xff] }
  0x1a   :  { %v3248_v24 = vsel %vm403_vm0, %v377_v9, 0 }
  0x1b   :  { %395 = vperm.xlu0 %3083, %v381_v10  }
  0x1d   :  { %156 = vperm.xlu1 %3085, %v41_v11  }
  0x1f   :  { %1324 = vperm.xlu0 %3083, %v1318_v12   ;;  %v3242_v12 = vsub.f32 %v3230_v48, %v491_v60 }
  0x21   :  { %390 = vperm.xlu1 %3085, %v380_v13   ;;  %v3245_v13 = vsub.f32 %v408_v49, %v3234_v61 }
  0x23   :  { %1334 = vperm.xlu0 %3083, %v1320_v14  }
  0x25   :  { %400 = vperm.xlu1 %3085, %v382_v15  }
  0x27   :  { %2256 = vperm.xlu0 %3083, %v2253_v16  }
  0x29   :  { %1329 = vperm.xlu1 %3085, %v1319_v17  }
  0x2d   :  { %1339 = vperm.xlu1 %3085, %v1321_v18  }
  0x81   :  { %v91_v22 = vpop.permute.xlu1 %90  ;;  %v99_v23 = vpop.permute.xlu0 %98 }
  0x82   :  { %v123_v55 = vmul.f32 %v118_v43, %v91_v22  ;;  %v124_v56 = vmul.f32 %v122_v44, %v91_v22  ;;  %v127_v10 = vmul.f32 %v118_v43, %v99_v23  ;;  %v128_v11 = vmul.f32 %v122_v44, %v99_v23 }
  0x85   :  { %v95_v29 = vpop.permute.xlu1 %94 }
  0x86   :  { %v45_v31 = vpop.permute.xlu0 %44  ;;  %v125_v50 = vmul.f32 %v118_v43, %v95_v29  ;;  %v126_v51 = vmul.f32 %v122_v44, %v95_v29 }
  0x87   :  { %v81_v52 = vmul.f32 %v76_v40, %v45_v31  ;;  %v82_v53 = vmul.f32 %v80_v41, %v45_v31 }
  0x89   :  { %v131_v0 = vadd.f32 %v123_v55, %v81_v52  ;;  %v132_v1 = vadd.f32 %v124_v56, %v82_v53 }
  0x8a   :  { %v50_v37 = vpop.permute.xlu0 %49  ;;  %v60_v38 = vpop.permute.xlu1 %59 }
  0x8b   :  { %v83_v45 = vmul.f32 %v76_v40, %v50_v37  ;;  %v84_v46 = vmul.f32 %v80_v41, %v50_v37  ;;  %v87_v18 = vmul.f32 %v76_v40, %v60_v38  ;;  %v88_v28 = vmul.f32 %v80_v41, %v60_v38 }
  0x8d   :  { %v133_v57 = vadd.f32 %v125_v50, %v83_v45  ;;  %v134_v58 = vadd.f32 %v126_v51, %v84_v46 }
  0x8e   :  { %v55_v47 = vpop.permute.xlu0 %54 }
  0x8f   :  { %v103_v54 = vpop.permute.xlu1 %102  ;;  %v85_v2 = vmul.f32 %v76_v40, %v55_v47  ;;  %v86_v3 = vmul.f32 %v80_v41, %v55_v47 }
  0x90   :  { %v129_v29 = vmul.f32 %v118_v43, %v103_v54  ;;  %v130_v30 = vmul.f32 %v122_v44, %v103_v54 }
  0x91   :  { %v135_v21 = vadd.f32 %v127_v10, %v85_v2  ;;  %v136_v22 = vadd.f32 %v128_v11, %v86_v3 }
  0x92   :  { %v147_v59 = vpop.permute.xlu0 %146  ;;  %v137_v9 = vadd.f32 %v129_v29, %v87_v18 }
  0x93   :  { %v161_v62 = vadd.f32 %v147_v59, %v133_v57  ;;  %v162_v63 = vadd.f32 %v147_v59, %v134_v58 }
  0x94   :  { %v142_v4 = vpop.permute.xlu1 %141 }
  0x95   :  { %v169_v5 = vmul.f32 0.31830987, %v161_v62  ;;  %v170_v6 = vmul.f32 0.31830987, %v162_v63  ;;  %v159_v7 = vadd.f32 %v142_v4, %v131_v0  ;;  %v160_v8 = vadd.f32 %v142_v4, %v132_v1 }
  0x97   :  { %v177_v14 = vadd.f32 0.5, %v169_v5  ;;  %v178_v15 = vadd.f32 0.5, %v170_v6  ;;  %v167_v16 = vmul.f32 0.31830987, %v159_v7  ;;  %v168_v17 = vmul.f32 0.31830987, %v160_v8 }
  0x98   :  { %v152_v20 = vpop.permute.xlu1 %151 }
  0x99   :  { %v185_v23 = vfloor.f32 %v177_v14  ;;  %v186_v25 = vfloor.f32 %v178_v15  ;;  %v175_v26 = vadd.f32 0.5, %v167_v16  ;;  %v176_v27 = vadd.f32 0.5, %v168_v17 }
  0x9a   :  { %v3250_v31 = vadd.f32 %v152_v20, %v135_v21  ;;  %v3252_v35 = vadd.f32 %v152_v20, %v136_v22 }
  0x9b   :  { %v193_v32 = vmul.f32 3.140625, %v185_v23  ;;  %v194_v33 = vmul.f32 3.140625, %v186_v25  ;;  %v209_v34 = vmul.f32 0.0009676536, %v185_v23  ;;  %v225_v36 = vmul.f32 0.5, %v185_v23 }
  0x9c   :  { %v226_v37 = vmul.f32 0.5, %v186_v25  ;;  %v183_v40 = vfloor.f32 %v175_v26  ;;  %v3254_v42 = vfloor.f32 %v176_v27  ;;  %v210_v47 = vmul.f32 0.0009676536, %v186_v25  ;;  %v157_v20 = vpop.permute.xlu1 %156 }
  0x9d   :  { %v201_v45 = vsub.f32 %v161_v62, %v193_v32  ;;  %v202_v46 = vsub.f32 %v162_v63, %v194_v33  ;;  %v171_v49 = vmul.f32 0.31830987, %v3250_v31  ;;  %v233_v38 = vfloor.f32 %v225_v36 }
  0x9e   :  { %v234_v41 = vfloor.f32 %v226_v37  ;;  %v191_v43 = vmul.f32 3.140625, %v183_v40  ;;  %v192_v44 = vmul.f32 3.140625, %v3254_v42  ;;  %v207_v52 = vmul.f32 0.0009676536, %v183_v40 }
  0x9f   :  { %v217_v50 = vsub.f32 %v201_v45, %v209_v34  ;;  %v218_v51 = vsub.f32 %v202_v46, %v210_v47  ;;  %v208_v53 = vmul.f32 0.0009676536, %v3254_v42  ;;  %v241_v54 = vmul.f32 2.0, %v233_v38 }
  0xa0   :  { %v242_v55 = vmul.f32 2.0, %v234_v41  ;;  %v199_v56 = vsub.f32 %v159_v7, %v191_v43  ;;  %v200_v57 = vsub.f32 %v160_v8, %v192_v44  ;;  %v223_v59 = vmul.f32 0.5, %v183_v40 }
  0xa1   :  { %v3259_v58 = vmul.f32 %v217_v50, %v217_v50  ;;  %v224_v62 = vmul.f32 0.5, %v3254_v42  ;;  %v172_v63 = vmul.f32 0.31830987, %v3252_v35  ;;  %v249_v0 = vsub.f32 %v185_v23, %v241_v54 }
  0xa2   :  { %v250_v1 = vsub.f32 %v186_v25, %v242_v55  ;;  %v215_v2 = vsub.f32 %v199_v56, %v207_v52  ;;  %v3263_v3 = vsub.f32 %v200_v57, %v208_v53  ;;  %v3265_v4 = vmul.f32 %v218_v51, %v218_v51 }
  0xa3   :  { %v231_v5 = vfloor.f32 %v223_v59  ;;  %v232_v6 = vfloor.f32 %v224_v62  ;;  %v257_v10 = vmul.f32 2.0, %v249_v0  ;;  %v179_v16 = vadd.f32 0.5, %v171_v49 }
  0xa4   :  { %v258_v7 = vmul.f32 2.0, %v250_v1  ;;  %v3267_v8 = vmul.f32 %v215_v2, %v215_v2  ;;  %v3271_v11 = vmul.f32 %v3263_v3, %v3263_v3  ;;  %v180_v17 = vadd.f32 0.5, %v172_v63 }
  0xa5   :  { %v239_v14 = vmul.f32 2.0, %v231_v5  ;;  %v240_v15 = vmul.f32 2.0, %v232_v6  ;;  %v265_v21 = vsub.f32 1.0, %v257_v10  ;;  %v3274_v23 = vmul.f32 -2.5052108e-08, %v3259_v58 }
  0xa6   :  { %v266_v22 = vsub.f32 1.0, %v258_v7  ;;  %v138_v25 = vadd.f32 %v130_v30, %v88_v28  ;;  %v282_v18 = vmul.f32 -2.5052108e-08, %v3265_v4  ;;  %v187_v27 = vfloor.f32 %v179_v16 }
  0xa7   :  { %v247_v26 = vsub.f32 %v183_v40, %v239_v14  ;;  %v188_v29 = vfloor.f32 %v180_v17  ;;  %v3278_v32 = vmul.f32 -2.5052108e-08, %v3267_v8  ;;  %v280_v33 = vmul.f32 -2.5052108e-08, %v3271_v11 }
  0xa8   :  { %v165_v34 = vadd.f32 %v157_v20, %v137_v9  ;;  %v166_v36 = vadd.f32 %v157_v20, %v138_v25  ;;  %v248_v37 = vsub.f32 %v3254_v42, %v240_v15  ;;  %v195_v46 = vmul.f32 3.140625, %v187_v27 }
  0xa9   :  { %v255_v45 = vmul.f32 2.0, %v247_v26  ;;  %v196_v47 = vmul.f32 3.140625, %v188_v29  ;;  %v3282_v49 = vmul.f32 %v265_v21, %v217_v50  ;;  %v3284_v28 = vmul.f32 %v266_v22, %v218_v51 }
  0xaa   :  { %v227_v30 = vmul.f32 0.5, %v187_v27  ;;  %v228_v40 = vmul.f32 0.5, %v188_v29  ;;  %v203_v38 = vsub.f32 %v3250_v31, %v195_v46  ;;  %v211_v43 = vmul.f32 0.0009676536, %v187_v27 }
  0xab   :  { %v204_v41 = vsub.f32 %v3252_v35, %v196_v47  ;;  %v212_v44 = vmul.f32 0.0009676536, %v188_v29  ;;  %v173_v54 = vmul.f32 0.31830987, %v165_v34  ;;  %v174_v55 = vmul.f32 0.31830987, %v166_v36 }
  0xac   :  { %v235_v52 = vfloor.f32 %v227_v30  ;;  %v236_v53 = vfloor.f32 %v228_v40  ;;  %v256_v42 = vmul.f32 2.0, %v248_v37  ;;  %v263_v56 = vsub.f32 1.0, %v255_v45 }
  0xad   :  { %v3288_v57 = vsub.f32 %v203_v38, %v211_v43  ;;  %v220_v50 = vsub.f32 %v204_v41, %v212_v44  ;;  %v181_v62 = vadd.f32 0.5, %v173_v54  ;;  %v182_v63 = vadd.f32 0.5, %v174_v55 }
  0xae   :  { %v243_v59 = vmul.f32 2.0, %v235_v52  ;;  %v244_v51 = vmul.f32 2.0, %v236_v53  ;;  %v288_v0 = vadd.f32 2.7557319e-06, %v280_v33  ;;  %v290_v1 = vadd.f32 2.7557319e-06, %v282_v18 }
  0xaf   :  { %v3292_v31 = vmul.f32 %v3288_v57, %v3288_v57  ;;  %v3294_v35 = vmul.f32 %v220_v50, %v220_v50  ;;  %v189_v9 = vfloor.f32 %v181_v62  ;;  %v190_v10 = vfloor.f32 %v182_v63 }
  0xb0   :  { %v251_v5 = vsub.f32 %v187_v27, %v243_v59  ;;  %v252_v6 = vsub.f32 %v188_v29, %v244_v51  ;;  %v264_v7 = vsub.f32 1.0, %v256_v42  ;;  %v3296_v14 = vmul.f32 %v263_v56, %v215_v2 }
  0xb1   :  { %v296_v15 = vmul.f32 %v288_v0, %v3271_v11  ;;  %v298_v16 = vmul.f32 %v290_v1, %v3265_v4  ;;  %v197_v21 = vmul.f32 3.140625, %v189_v9  ;;  %v198_v22 = vmul.f32 3.140625, %v190_v10 }
  0xb2   :  { %v3300_v17 = vmul.f32 2.0, %v251_v5  ;;  %v260_v20 = vmul.f32 2.0, %v252_v6  ;;  %v283_v25 = vmul.f32 -2.5052108e-08, %v3292_v31  ;;  %v284_v18 = vmul.f32 -2.5052108e-08, %v3294_v35 }
  0xb3   :  { %v229_v26 = vmul.f32 0.5, %v189_v9  ;;  %v230_v27 = vmul.f32 0.5, %v190_v10  ;;  %v205_v29 = vsub.f32 %v165_v34, %v197_v21  ;;  %v206_v33 = vsub.f32 %v166_v36, %v198_v22 }
  0xb4   :  { %v213_v37 = vmul.f32 0.0009676536, %v189_v9  ;;  %v214_v2 = vmul.f32 0.0009676536, %v190_v10  ;;  %v304_v47 = vadd.f32 -0.0001984127, %v296_v15 }
  0xb5   :  { %v237_v45 = vfloor.f32 %v229_v26  ;;  %v238_v46 = vfloor.f32 %v230_v27  ;;  %v306_v30 = vadd.f32 -0.0001984127, %v298_v16  ;;  %v267_v40 = vsub.f32 1.0, %v3300_v17 }
  0xb6   :  { %v268_v38 = vsub.f32 1.0, %v260_v20  ;;  %v3305_v41 = vsub.f32 %v205_v29, %v213_v37  ;;  %v222_v43 = vsub.f32 %v206_v33, %v214_v2  ;;  %v312_v53 = vmul.f32 %v304_v47, %v3271_v11 }
  0xb7   :  { %v245_v44 = vmul.f32 2.0, %v237_v45  ;;  %v246_v52 = vmul.f32 2.0, %v238_v46  ;;  %v314_v54 = vmul.f32 %v306_v30, %v3265_v4  ;;  %v287_v55 = vadd.f32 2.7557319e-06, %v3278_v32 }
  0xb8   :  { %v3311_v34 = vmul.f32 %v3305_v41, %v3305_v41  ;;  %v3313_v36 = vmul.f32 %v222_v43, %v222_v43  ;;  %v289_v42 = vadd.f32 2.7557319e-06, %v3274_v23  ;;  %v320_v51 = vadd.f32 0.008333334, %v312_v53 }
  0xb9   :  { %v253_v56 = vsub.f32 %v189_v9, %v245_v44  ;;  %v254_v59 = vsub.f32 %v190_v10, %v246_v52  ;;  %v322_v62 = vadd.f32 0.008333334, %v314_v54  ;;  %v295_v1 = vmul.f32 %v287_v55, %v3267_v8 }
  0xba   :  { %v285_v63 = vmul.f32 -2.5052108e-08, %v3311_v34  ;;  %v286_v0 = vmul.f32 -2.5052108e-08, %v3313_v36  ;;  %v297_v5 = vmul.f32 %v289_v42, %v3259_v58  ;;  %v328_v16 = vmul.f32 %v320_v51, %v3271_v11 }
  0xbb   :  { %v3321_v6 = vmul.f32 2.0, %v253_v56  ;;  %v262_v15 = vmul.f32 2.0, %v254_v59  ;;  %v330_v32 = vmul.f32 %v322_v62, %v3265_v4  ;;  %v360_v23 = vmul.f32 %v264_v7, %v3263_v3 }
  0xbc   :  { %v303_v9 = vadd.f32 -0.0001984127, %v295_v1  ;;  %v305_v10 = vadd.f32 -0.0001984127, %v297_v5  ;;  %v292_v20 = vadd.f32 2.7557319e-06, %v284_v18  ;;  %v3326_v21 = vmul.f32 %v268_v38, %v220_v50 }
  0xbd   :  { %v270_v22 = vsub.f32 1.0, %v262_v15  ;;  %v336_v26 = vadd.f32 -0.16666667, %v328_v16  ;;  %v338_v27 = vadd.f32 -0.16666667, %v330_v32  ;;  %v269_v45 = vsub.f32 1.0, %v3321_v6 }
  0xbe   :  { %v311_v29 = vmul.f32 %v303_v9, %v3267_v8  ;;  %v313_v33 = vmul.f32 %v305_v10, %v3259_v58  ;;  %v294_v37 = vadd.f32 2.7557319e-06, %v286_v0  ;;  %v300_v2 = vmul.f32 %v292_v20, %v3294_v35 }
  0xbf   :  { %v3332_v46 = vmul.f32 %v270_v22, %v222_v43  ;;  %v344_v3 = vmul.f32 %v336_v26, %v3271_v11  ;;  %v346_v7 = vmul.f32 %v338_v27, %v3265_v4  ;;  %v291_v52 = vadd.f32 2.7557319e-06, %v283_v25 }
  0xc0   :  { %v319_v50 = vadd.f32 0.008333334, %v311_v29  ;;  %v321_v18 = vadd.f32 0.008333334, %v313_v33  ;;  %v302_v47 = vmul.f32 %v294_v37, %v3313_v36  ;;  %v308_v30 = vadd.f32 -0.0001984127, %v300_v2 }
  0xc1   :  { %v352_v38 = vadd.f32 1.0, %v344_v3  ;;  %v354_v44 = vadd.f32 1.0, %v346_v7  ;;  %v293_v53 = vadd.f32 2.7557319e-06, %v285_v63  ;;  %v299_v4 = vmul.f32 %v291_v52, %v3292_v31 }
  0xc2   :  { %v327_v54 = vmul.f32 %v319_v50, %v3267_v8  ;;  %v329_v55 = vmul.f32 %v321_v18, %v3259_v58  ;;  %v310_v42 = vadd.f32 -0.0001984127, %v302_v47  ;;  %v316_v43 = vmul.f32 %v308_v30, %v3294_v35 }
  0xc3   :  { %v368_v56 = vmul.f32 %v360_v23, %v352_v38  ;;  %v370_v11 = vmul.f32 %v3284_v28, %v354_v44  ;;  %v301_v59 = vmul.f32 %v293_v53, %v3311_v34  ;;  %v307_v5 = vadd.f32 -0.0001984127, %v299_v4 }
  0xc4   :  { %v335_v51 = vadd.f32 -0.16666667, %v327_v54  ;;  %v337_v62 = vadd.f32 -0.16666667, %v329_v55  ;;  %v318_v0 = vmul.f32 %v310_v42, %v3313_v36  ;;  %v324_v25 = vadd.f32 0.008333334, %v316_v43 }
  0xc5   :  { %v416_v63 = vand.u32 4294901760, %v368_v56  ;;  %v420_v1 = vand.u32 4294901760, %v370_v11  ;;  %v309_v15 = vadd.f32 -0.0001984127, %v301_v59  ;;  %v315_v22 = vmul.f32 %v307_v5, %v3292_v31 }
  0xc6   :  { %v343_v16 = vmul.f32 %v335_v51, %v3267_v8  ;;  %v345_v32 = vmul.f32 %v337_v62, %v3259_v58  ;;  %v326_v23 = vadd.f32 0.008333334, %v318_v0  ;;  %v332_v28 = vmul.f32 %v324_v25, %v3294_v35 }
  0xc7   :  { %v3347_v9 = vpack.c.bf16 %v420_v1, %v416_v63  ;;  %v3349_v10 = vsub.f32 %v368_v56, %v416_v63  ;;  %v3351_v20 = vsub.f32 %v370_v11, %v420_v1  ;;  %v317_v37 = vmul.f32 %v309_v15, %v3311_v34 }
  0xc8   :  { %v351_v26 = vadd.f32 1.0, %v343_v16  ;;  %v353_v27 = vadd.f32 1.0, %v345_v32  ;;  %v334_v29 = vmul.f32 %v326_v23, %v3313_v36  ;;  %v340_v33 = vadd.f32 -0.16666667, %v332_v28 }
  0xc9   :  { %2825 = vmatprep.subr.bf16.mxu1 %v3347_v9  ;;  %v535_v58 = vand.u32 4294901760, %v3349_v10  ;;  %v547_v8 = vand.u32 4294901760, %v3351_v20  ;;  %v323_v2 = vadd.f32 0.008333334, %v315_v22  ;;  %v325_v38 = vadd.f32 0.008333334, %v317_v37 }
  0xca   :  { %v367_v3 = vmul.f32 %v3296_v14, %v351_v26  ;;  %v369_v7 = vmul.f32 %v3282_v49, %v353_v27  ;;  %v342_v50 = vadd.f32 -0.16666667, %v334_v29  ;;  %v348_v18 = vmul.f32 %v340_v33, %v3294_v35 }
  0xcb   :  { %v536_v47 = vsub.f32 %v3349_v10, %v535_v58  ;;  %v548_v30 = vsub.f32 %v3351_v20, %v547_v8  ;;  %v331_v44 = vmul.f32 %v323_v2, %v3292_v31  ;;  %v333_v35 = vmul.f32 %v325_v38, %v3311_v34 }
  0xcc   :  { %v418_v52 = vand.u32 4294901760, %v367_v3  ;;  %v422_v53 = vand.u32 4294901760, %v369_v7  ;;  %v350_v14 = vmul.f32 %v342_v50, %v3313_v36  ;;  %v356_v54 = vadd.f32 1.0, %v348_v18  ;;  %v378_v36 = vld [vmem:[%s3965_s3 + $0x18] sm:$0xff] }
  0xcd   :  { %v537_v49 = vand.u32 4294901760, %v536_v47  ;;  %v549_v55 = vand.u32 4294901760, %v548_v30  ;;  %v339_v42 = vadd.f32 -0.16666667, %v331_v44  ;;  %v341_v62 = vadd.f32 -0.16666667, %v333_v35 }
  0xce   :  { %v3371_v43 = vpack.c.bf16 %v422_v53, %v418_v52  ;;  %v3373_v56 = vsub.f32 %v367_v3, %v418_v52  ;;  %v3375_v11 = vsub.f32 %v369_v7, %v422_v53  ;;  %v358_v4 = vadd.f32 1.0, %v350_v14 }
  0xcf   :  { %v372_v59 = vmul.f32 %v3326_v21, %v356_v54  ;;  %v2832_v51 = vpack.c.bf16 %v549_v55, %v537_v49  ;;  %v347_v0 = vmul.f32 %v339_v42, %v3292_v31  ;;  %v3387_v5 = vand.u32 4294901760, %v3248_v24 }
  0xd0   :  { %2827 = vmatpush1.bf16.msra.mxu1 %v3371_v43  ;;  %v374_v25 = vmul.f32 %v3332_v46, %v358_v4  ;;  %v541_v63 = vand.u32 4294901760, %v3373_v56  ;;  %v553_v1 = vand.u32 4294901760, %v3375_v11  ;;  %v363_v21 = vmul.f32 %v267_v40, %v3288_v57 }
  0xd1   :  { %v424_v31 = vand.u32 4294901760, %v372_v59  ;;  %2833 = vmatprep.subr.bf16.mxu0 %v2832_v51  ;;  %v349_v15 = vmul.f32 %v341_v62, %v3311_v34  ;;  %v355_v16 = vadd.f32 1.0, %v347_v0  ;;  %v414_v28 = vsel %vm403_vm0, %v378_v36, 0 }
  0xd2   :  { %v428_v32 = vand.u32 4294901760, %v374_v25  ;;  %v542_v46 = vsub.f32 %v3373_v56, %v541_v63  ;;  %v554_v23 = vsub.f32 %v3375_v11, %v553_v1  ;;  %v365_v57 = vmul.f32 %v269_v45, %v3305_v41 }
  0xd3   :  { %v3403_v17 = vsub.f32 %v372_v59, %v424_v31  ;;  %v357_v40 = vadd.f32 1.0, %v349_v15  ;;  %v371_v34 = vmul.f32 %v363_v21, %v355_v16  ;;  %v502_v2 = vand.u32 4294901760, %v3245_v13 }
  0xd4   :  { %v3405_v22 = vpack.c.bf16 %v428_v32, %v424_v31  ;;  %v3407_v26 = vsub.f32 %v374_v25, %v428_v32  ;;  %v543_v27 = vand.u32 4294901760, %v542_v46  ;;  %v555_v29 = vand.u32 4294901760, %v554_v23 }
  0xd5   :  { %v373_v33 = vmul.f32 %v365_v57, %v357_v40  ;;  %v426_v37 = vand.u32 4294901760, %v371_v34  ;;  %v559_v3 = vand.u32 4294901760, %v3403_v17  ;;  %v3415_v45 = vsub.f32 %v3248_v24, %v3387_v5 }
  0xd6   :  { %2829 = vmatprep.subr.bf16.mxu1 %v3405_v22  ;;  %v2834_v6 = vpack.c.bf16 %v555_v29, %v543_v27  ;;  %v571_v41 = vand.u32 4294901760, %v3407_v26  ;;  %v3417_v7 = vand.u32 4294901760, %v414_v28  ;;  %v493_v30 = vand.u32 4294901760, %v3242_v12  ;;  %v1315_v27 = vld [vmem:[%s3967_s5 + $0x8] sm:$0xff] }
  0xd7   :  { %v430_v50 = vand.u32 4294901760, %v373_v33  ;;  %v3419_v18 = vsub.f32 %v371_v34, %v426_v37  ;;  %v560_v47 = vsub.f32 %v3403_v17, %v559_v3  ;;  %v503_v52 = vsub.f32 %v3245_v13, %v502_v2 }
  0xd8   :  { %2835 = vmatpush1.bf16.msra.mxu0 %v2834_v6  ;;  %v572_v38 = vsub.f32 %v3407_v26, %v571_v41  ;;  %v513_v49 = vand.u32 4294901760, %v3415_v45  ;;  %v3438_v12 = vsub.f32 %v414_v28, %v3417_v7  ;;  %v2840_v21 = vpack.c.bf16 %v3351_v20, %v3349_v10 }
  0xd9   :  { %v3428_v44 = vpack.c.bf16 %v430_v50, %v426_v37  ;;  %v3430_v24 = vsub.f32 %v373_v33, %v430_v50  ;;  %v565_v53 = vand.u32 4294901760, %v3419_v18  ;;  %v561_v14 = vand.u32 4294901760, %v560_v47 }
  0xda   :  { %v573_v54 = vand.u32 4294901760, %v572_v38  ;;  %v504_v59 = vand.u32 4294901760, %v503_v52  ;;  %v514_v51 = vsub.f32 %v3415_v45, %v513_v49  ;;  %v524_v62 = vand.u32 4294901760, %v3438_v12 }
  0xdb   :  { %2831 = vmatpush1.bf16.msra.mxu1 %v3428_v44  ;;  %v566_v55 = vsub.f32 %v3419_v18, %v565_v53  ;;  %v577_v35 = vand.u32 4294901760, %v3430_v24  ;;  %v2842_v16 = vpack.c.bf16 %v3375_v11, %v3373_v56  ;;  %v2844_v32 = vpack.c.bf16 %v3407_v26, %v3403_v17 }
  0xdc   :  { %v2836_v42 = vpack.c.bf16 %v573_v54, %v561_v14  ;;  %v515_v31 = vand.u32 4294901760, %v514_v51  ;;  %v525_v15 = vsub.f32 %v3438_v12, %v524_v62  ;;  %v2846_v23 = vpack.c.bf16 %v3430_v24, %v3419_v18 }
  0xdd   :  { %v578_v4 = vsub.f32 %v3430_v24, %v577_v35  ;;  %v567_v0 = vand.u32 4294901760, %v566_v55  ;;  %v2856_v28 = vpack.c.bf16 %v547_v8, %v535_v58  ;;  %v2858_v10 = vpack.c.bf16 %v553_v1, %v541_v63  ;;  %v386_v63 = vpop.permute.xlu0 %385 }
  0xde   :  { %494 = vmatmul.mubr.f32.vlgmr.msra.gmra.mrb[0].mxu1 %v493_v30  ;;  %2837 = vmatprep.subr.bf16.mxu0 %v2836_v42  ;;  %v526_v46 = vand.u32 4294901760, %v525_v15  ;;  %v2860_v20 = vpack.c.bf16 %v571_v41, %v559_v3  ;;  %v2862_v58 = vpack.c.bf16 %v577_v35, %v565_v53  ;;  %v1346_v18 = vsel %vm403_vm0, %v1315_v27, 0 }
  0xdf   :  { %499 = vmatprep.mubr.f32.mxu1 %v3112_v19  ;;  %v579_v36 = vand.u32 4294901760, %v578_v4  ;;  %v3545_v42 = vand.u32 4294901760, %v1346_v18 }
  0xe1   :  { %v2838_v25 = vpack.c.bf16 %v579_v36, %v567_v0  ;;  %v396_v41 = vpop.permute.xlu0 %395 }
  0xe2   :  { %505 = vmatmul.mubr.f32.gmra.mrb[2].mxu1 %v504_v59 }
  0xe3   :  { %2839 = vmatpush1.bf16.msra.mxu0 %v2838_v25  ;;  %510 = vmatprep.mubr.f32.mxu1 %v3112_v19 }
  0xe4   :  { %2841 = vmatprep.subr.bf16.mxu0 %v2840_v21 }
  0xe6   :  { %516 = vmatmul.mubr.f32.gmra.mrb[4].mxu1 %v515_v31  ;;  %639 = vmatmul.mubr.f32.vlgmr.msra.gmra.mrb[0].mxu0 %v3224_v39 }
  0xe7   :  { %2843 = vmatpush1.bf16.msra.mxu0 %v2842_v16  ;;  %521 = vmatprep.mubr.f32.mxu1 %v3112_v19 }
  0xe8   :  { %2845 = vmatprep.subr.bf16.mxu0 %v2844_v32  ;;  %644 = vmatprep.mubr.f32.mxu0 %v3112_v19 }
  0xea   :  { %527 = vmatmul.mubr.f32.gmra.mrb[6].mxu1 %v526_v46  ;;  %646 = vmatmul.mubr.f32.gmra.mrb[2].mxu0 %v3234_v61 }
  0xeb   :  { %2847 = vmatpush1.bf16.msra.mxu0 %v2846_v23  ;;  %651 = vmatprep.mubr.f32.mxu0 %v3112_v19 }
  0xec   :  { %2849 = vmatprep.subr.bf16.mxu0 %v3347_v9  ;;  %1426 = vmatprep.mubr.f32.mxu1 %v3112_v19 }
  0xee   :  { %653 = vmatmul.mubr.f32.gmra.mrb[4].mxu0 %v3387_v5 }
  0xef   :  { %658 = vmatprep.mubr.f32.mxu0 %v3112_v19 }
  0xf2   :  { %660 = vmatmul.mubr.f32.gmra.mrb[6].mxu0 %v3417_v7 }
  0xf3   :  { %746 = vmatprep.mubr.f32.mxu0 %v3112_v19 }
  0xf6   :  { %749 = vmatmul.mubr.f32.vlgmr.msra.gmra.mrb[0].mxu0 %v3230_v48 }
  0xf7   :  { %2851 = vmatpush1.bf16.msra.mxu0 %v3371_v43  ;;  %754 = vmatprep.mubr.f32.mxu0 %v3112_v19 }
  0xf8   :  { %2853 = vmatprep.subr.bf16.mxu0 %v3405_v22 }
  0xfa   :  { %757 = vmatmul.mubr.f32.gmra.mrb[2].mxu0 %v3245_v13 }
  0xfb   :  { %2855 = vmatpush1.bf16.msra.mxu0 %v3428_v44  ;;  %762 = vmatprep.mubr.f32.mxu0 %v3112_v19 }
  0xfc   :  { %2857 = vmatprep.subr.bf16.mxu0 %v2856_v28 }
  0xfe   :  { %765 = vmatmul.mubr.f32.gmra.mrb[4].mxu0 %v3415_v45 }
  0xff   :  { %770 = vmatprep.mubr.f32.mxu0 %v3112_v19 }
 0x102   :  { %773 = vmatmul.mubr.f32.gmra.mrb[6].mxu0 %v3438_v12 }
 0x103   :  { %851 = vmatprep.mubr.f32.mxu0 %v3112_v19 }
 0x106   :  { %855 = vmatmul.mubr.f32.vlgmr.msra.gmra.mrb[0].mxu0 %v491_v60 }
 0x107   :  { %2859 = vmatpush1.bf16.msra.mxu0 %v2858_v10  ;;  %860 = vmatprep.mubr.f32.mxu0 %v3112_v19 }
 0x108   :  { %2861 = vmatprep.subr.bf16.mxu0 %v2860_v20 }
 0x10a   :  { %864 = vmatmul.mubr.f32.gmra.mrb[2].mxu0 %v502_v2 }
 0x10b   :  { %2863 = vmatpush1.bf16.msra.mxu0 %v2862_v58  ;;  %869 = vmatprep.mubr.f32.mxu0 %v3112_v19 }
 0x10c   :  { %2865 = vmatprep.subr.bf16.mxu0 %v3347_v9 }
 0x10e   :  { %873 = vmatmul.mubr.f32.gmra.mrb[4].mxu0 %v513_v49 }
 0x10f   :  { %878 = vmatprep.mubr.f32.mxu0 %v3112_v19 }
 0x112   :  { %882 = vmatmul.mubr.f32.gmra.mrb[6].mxu0 %v524_v62 }
 0x113   :  { %976 = vmatprep.mubr.f32.mxu0 %v3112_v19 }
 0x116   :  { %978 = vmatmul.mubr.f32.vlgmr.msra.gmra.mrb[0].mxu0 %v3224_v39 }
 0x117   :  { %2867 = vmatpush1.bf16.msra.mxu0 %v3371_v43  ;;  %983 = vmatprep.mubr.f32.mxu0 %v3112_v19 }
 0x118   :  { %2869 = vmatprep.subr.bf16.mxu0 %v3405_v22 }
 0x11a   :  { %985 = vmatmul.mubr.f32.gmra.mrb[2].mxu0 %v3234_v61 }
 0x11b   :  { %2871 = vmatpush1.bf16.msra.mxu0 %v3428_v44  ;;  %990 = vmatprep.mubr.f32.mxu0 %v3112_v19 }
 0x11e   :  { %992 = vmatmul.mubr.f32.gmra.mrb[4].mxu0 %v3387_v5 }
 0x11f   :  { %997 = vmatprep.mubr.f32.mxu0 %v3112_v19 }
 0x122   :  { %999 = vmatmul.mubr.f32.gmra.mrb[6].mxu0 %v3417_v7 }
 0x123   :  { %1077 = vmatprep.mubr.f32.mxu0 %v3112_v19 }
 0x126   :  { %1079 = vmatmul.mubr.f32.vlgmr.msra.gmra.mrb[0].mxu0 %v3224_v39 }
 0x127   :  { %1084 = vmatprep.mubr.f32.mxu0 %v3112_v19 }
 0x12a   :  { %1086 = vmatmul.mubr.f32.gmra.mrb[2].mxu0 %v3234_v61  ;;  %v1314_v61 = vld [vmem:[%s3967_s5] sm:$0xff] }
 0x12b   :  { %1091 = vmatprep.mubr.f32.mxu0 %v3112_v19  ;;  %v1343_v11 = vsel %vm403_vm0, %v1314_v61, 0 }
 0x12c   :  { %v3531_v40 = vand.u32 4294901760, %v1343_v11 }
 0x12e   :  { %1093 = vmatmul.mubr.f32.gmra.mrb[4].mxu0 %v3387_v5  ;;  %v391_v5 = vpop.permute.xlu1 %390  ;;  %v3537_v6 = vsub.f32 %v1343_v11, %v3531_v40 }
 0x12f   :  { %1098 = vmatprep.mubr.f32.mxu0 %v3112_v19 }
 0x130   :  { %v1429_v35 = vand.u32 4294901760, %v3537_v6 }
 0x132   :  { %1100 = vmatmul.mubr.f32.gmra.mrb[6].mxu0 %v3417_v7  ;;  %v401_v47 = vpop.permute.xlu1 %400 }
 0x133   :  { %2450 = vmatprep.mubr.f32.mxu0 %v3112_v19 }
 0x1b1   :  { %v495_v48 = vpop.f32.mrb[0].mxu1 }
 0x1b2   :  { %v497_v60 = vpop.f32.mrb[1].mxu1  ;;  %v496_v1 = vadd.f32 %v495_v48, %v386_v63 }
 0x1b3   :  { %v498_v57 = vadd.f32 %v497_v60, %v386_v63 }
 0x1b5   :  { %v506_v13 = vpop.f32.mrb[2].mxu1 }
 0x1b6   :  { %v508_v9 = vpop.f32.mrb[3].mxu1  ;;  %v507_v29 = vadd.f32 %v506_v13, %v391_v5 }
 0x1b7   :  { %v509_v37 = vadd.f32 %v508_v9, %v391_v5 }
 0x1b9   :  { %v517_v8 = vpop.f32.mrb[4].mxu1 }
 0x1ba   :  { %v519_v39 = vpop.f32.mrb[5].mxu1  ;;  %v518_v30 = vadd.f32 %v517_v8, %v396_v41 }
 0x1bb   :  { %v520_v38 = vadd.f32 %v519_v39, %v396_v41 }
 0x1bd   :  { %v528_v43 = vpop.f32.mrb[6].mxu1 }
 0x1be   :  { %v530_v56 = vpop.f32.mrb[7].mxu1  ;;  %v3540_v52 = vadd.f32 %v528_v43, %v401_v47 }
 0x1bf   :  { %v3542_v53 = vadd.f32 %v530_v56, %v401_v47  ;;  %v3566_v47 = vsub.f32 %v1346_v18, %v3545_v42 }
 0x1f9   :  { %v1080_v17 = vpop.f32.mrb[0].mxu0 }
 0x1fa   :  { %v2969_v34 = vadd.f32 %v1080_v17, %v496_v1  ;;  %v1082_v22 = vpop.f32.mrb[1].mxu0 }
 0x1fb   :  { %v2971_v26 = vadd.f32 %v1082_v22, %v498_v57 }
 0x1fc   :  { %v1106_v33 = vmul.f32 0.31830987, %v2969_v34 }
 0x1fd   :  { %v1107_v2 = vmul.f32 0.31830987, %v2971_v26  ;;  %v1087_v3 = vpop.f32.mrb[2].mxu0 }
 0x1fe   :  { %v1114_v45 = vadd.f32 0.5, %v1106_v33  ;;  %v2973_v7 = vadd.f32 %v1087_v3, %v507_v29  ;;  %v1089_v50 = vpop.f32.mrb[3].mxu0 }
 0x1ff   :  { %v1115_v44 = vadd.f32 0.5, %v1107_v2  ;;  %v2975_v24 = vadd.f32 %v1089_v50, %v509_v37 }
 0x200   :  { %v1122_v14 = vfloor.f32 %v1114_v45  ;;  %v1108_v54 = vmul.f32 0.31830987, %v2973_v7 }
 0x201   :  { %v1123_v49 = vfloor.f32 %v1115_v44  ;;  %v1109_v12 = vmul.f32 0.31830987, %v2975_v24  ;;  %v1094_v55 = vpop.f32.mrb[4].mxu0 }
 0x202   :  { %v1130_v4 = vmul.f32 3.140625, %v1122_v14  ;;  %v1146_v59 = vmul.f32 0.0009676536, %v1122_v14  ;;  %v1162_v51 = vmul.f32 0.5, %v1122_v14  ;;  %v1116_v62 = vadd.f32 0.5, %v1108_v54  ;;  %v1096_v0 = vpop.f32.mrb[5].mxu0 }
 0x203   :  { %v1131_v36 = vmul.f32 3.140625, %v1123_v49  ;;  %v1147_v25 = vmul.f32 0.0009676536, %v1123_v49  ;;  %v1163_v21 = vmul.f32 0.5, %v1123_v49  ;;  %v1117_v31 = vadd.f32 0.5, %v1109_v12 }
 0x204   :  { %v1138_v15 = vsub.f32 %v2969_v34, %v1130_v4  ;;  %v1170_v16 = vfloor.f32 %v1162_v51  ;;  %v1124_v32 = vfloor.f32 %v1116_v62  ;;  %v3547_v46 = vadd.f32 %v1094_v55, %v518_v30  ;;  %v1316_v30 = vld [vmem:[%s3967_s5 + $0x10] sm:$0xff] }
 0x205   :  { %v1139_v23 = vsub.f32 %v2971_v26, %v1131_v36  ;;  %v1171_v28 = vfloor.f32 %v1163_v21  ;;  %v1125_v10 = vfloor.f32 %v1117_v31  ;;  %v3549_v20 = vadd.f32 %v1096_v0, %v520_v38  ;;  %v1101_v58 = vpop.f32.mrb[6].mxu0 }
 0x206   :  { %v1154_v48 = vsub.f32 %v1138_v15, %v1146_v59  ;;  %v1178_v60 = vmul.f32 2.0, %v1170_v16  ;;  %v1132_v13 = vmul.f32 3.140625, %v1124_v32  ;;  %v1148_v9 = vmul.f32 0.0009676536, %v1124_v32  ;;  %v1103_v8 = vpop.f32.mrb[7].mxu0 }
 0x207   :  { %v1155_v39 = vsub.f32 %v1139_v23, %v1147_v25  ;;  %v1179_v43 = vmul.f32 2.0, %v1171_v28  ;;  %v1164_v56 = vmul.f32 0.5, %v1124_v32  ;;  %v1133_v61 = vmul.f32 3.140625, %v1125_v10 }
 0x208   :  { %v1186_v11 = vsub.f32 %v1122_v14, %v1178_v60  ;;  %v3551_v63 = vmul.f32 %v1154_v48, %v1154_v48  ;;  %v1140_v1 = vsub.f32 %v2973_v7, %v1132_v13  ;;  %v1149_v5 = vmul.f32 0.0009676536, %v1125_v10 }
 0x209   :  { %v1187_v57 = vsub.f32 %v1123_v49, %v1179_v43  ;;  %v3553_v17 = vmul.f32 %v1155_v39, %v1155_v39  ;;  %v1172_v34 = vfloor.f32 %v1164_v56  ;;  %v1141_v22 = vsub.f32 %v2975_v24, %v1133_v61 }
 0x20a   :  { %v1194_v26 = vmul.f32 2.0, %v1186_v11  ;;  %v1218_v27 = vmul.f32 -2.5052108e-08, %v3551_v63  ;;  %v3556_v29 = vsub.f32 %v1140_v1, %v1148_v9  ;;  %v1165_v33 = vmul.f32 0.5, %v1125_v10 }
 0x20b   :  { %v1195_v37 = vmul.f32 2.0, %v1187_v57  ;;  %v1219_v2 = vmul.f32 -2.5052108e-08, %v3553_v17  ;;  %v1180_v3 = vmul.f32 2.0, %v1172_v34  ;;  %v3559_v41 = vsub.f32 %v1141_v22, %v1149_v5 }
 0x20c   :  { %v1226_v45 = vadd.f32 2.7557319e-06, %v1218_v27  ;;  %v3563_v7 = vmul.f32 %v3556_v29, %v3556_v29  ;;  %v1173_v50 = vfloor.f32 %v1165_v33  ;;  %v1202_v38 = vsub.f32 1.0, %v1194_v26 }
 0x20d   :  { %v1203_v44 = vsub.f32 1.0, %v1195_v37  ;;  %v1188_v24 = vsub.f32 %v1124_v32, %v1180_v3  ;;  %v3573_v14 = vmul.f32 %v3559_v41, %v3559_v41  ;;  %v3576_v49 = vadd.f32 2.7557319e-06, %v1219_v2 }
 0x20e   :  { %v1234_v54 = vmul.f32 %v1226_v45, %v3551_v63  ;;  %v1220_v12 = vmul.f32 -2.5052108e-08, %v3563_v7  ;;  %v1181_v55 = vmul.f32 2.0, %v1173_v50  ;;  %v1110_v59 = vmul.f32 0.31830987, %v3547_v46 }
 0x20f   :  { %v1196_v18 = vmul.f32 2.0, %v1188_v24  ;;  %v1221_v4 = vmul.f32 -2.5052108e-08, %v3573_v14  ;;  %v3582_v51 = vsel %vm403_vm0, %v1316_v30, 0  ;;  %v1111_v25 = vmul.f32 0.31830987, %v3549_v20 }
 0x210   :  { %v1242_v62 = vadd.f32 -0.0001984127, %v1234_v54  ;;  %v1228_v0 = vadd.f32 2.7557319e-06, %v1220_v12  ;;  %v1189_v36 = vsub.f32 %v1125_v10, %v1181_v55  ;;  %v1298_v21 = vmul.f32 %v1202_v38, %v1154_v48 }
 0x211   :  { %v3585_v31 = vmul.f32 %v1203_v44, %v1155_v39  ;;  %v1118_v15 = vadd.f32 0.5, %v1110_v59  ;;  %v2981_v16 = vadd.f32 %v1101_v58, %v3540_v52  ;;  %v1119_v60 = vadd.f32 0.5, %v1111_v25 }
 0x212   :  { %v1250_v32 = vmul.f32 %v1242_v62, %v3551_v63  ;;  %v1236_v23 = vmul.f32 %v1228_v0, %v3563_v7  ;;  %v1197_v28 = vmul.f32 2.0, %v1189_v36  ;;  %v1204_v13 = vsub.f32 1.0, %v1196_v18 }
 0x213   :  { %v1126_v9 = vfloor.f32 %v1118_v15  ;;  %v1112_v43 = vmul.f32 0.31830987, %v2981_v16  ;;  %v3591_v56 = vadd.f32 %v1103_v8, %v3542_v53  ;;  %v1229_v48 = vadd.f32 2.7557319e-06, %v1221_v4 }
 0x214   :  { %v1258_v10 = vadd.f32 0.008333334, %v1250_v32  ;;  %v1244_v61 = vadd.f32 -0.0001984127, %v1236_v23  ;;  %v1127_v39 = vfloor.f32 %v1119_v60  ;;  %v1205_v11 = vsub.f32 1.0, %v1197_v28 }
 0x215   :  { %v1134_v1 = vmul.f32 3.140625, %v1126_v9  ;;  %v1166_v5 = vmul.f32 0.5, %v1126_v9  ;;  %v1120_v52 = vadd.f32 0.5, %v1112_v43  ;;  %v1150_v34 = vmul.f32 0.0009676536, %v1126_v9 }
 0x216   :  { %v1266_v58 = vmul.f32 %v1258_v10, %v3551_v63  ;;  %v1252_v57 = vmul.f32 %v1244_v61, %v3563_v7  ;;  %v1135_v22 = vmul.f32 3.140625, %v1127_v39  ;;  %v1151_v33 = vmul.f32 0.0009676536, %v1127_v39 }
 0x217   :  { %v1142_v26 = vsub.f32 %v3547_v46, %v1134_v1  ;;  %v1174_v27 = vfloor.f32 %v1166_v5  ;;  %v1167_v53 = vmul.f32 0.5, %v1127_v39  ;;  %v1128_v3 = vfloor.f32 %v1120_v52 }
 0x218   :  { %v1274_v8 = vadd.f32 -0.16666667, %v1266_v58  ;;  %v1260_v37 = vadd.f32 0.008333334, %v1252_v57  ;;  %v1143_v2 = vsub.f32 %v3549_v20, %v1135_v22  ;;  %v1113_v38 = vmul.f32 0.31830987, %v3591_v56 }
 0x219   :  { %v3597_v45 = vsub.f32 %v1142_v26, %v1150_v34  ;;  %v1182_v50 = vmul.f32 2.0, %v1174_v27  ;;  %v1175_v30 = vfloor.f32 %v1167_v53  ;;  %v1136_v46 = vmul.f32 3.140625, %v1128_v3 }
 0x21a   :  { %v1282_v44 = vmul.f32 %v1274_v8, %v3551_v63  ;;  %v1268_v24 = vmul.f32 %v1260_v37, %v3563_v7  ;;  %v1159_v54 = vsub.f32 %v1143_v2, %v1151_v33  ;;  %v1152_v20 = vmul.f32 0.0009676536, %v1128_v3 }
 0x21b   :  { %v1190_v12 = vsub.f32 %v1126_v9, %v1182_v50  ;;  %v3604_v55 = vmul.f32 %v3597_v45, %v3597_v45  ;;  %v1183_v18 = vmul.f32 2.0, %v1175_v30  ;;  %v1144_v0 = vsub.f32 %v2981_v16, %v1136_v46 }
 0x21c   :  { %v1290_v4 = vadd.f32 1.0, %v1282_v44  ;;  %v1276_v59 = vadd.f32 -0.16666667, %v1268_v24  ;;  %v3606_v62 = vmul.f32 %v1159_v54, %v1159_v54  ;;  %v1168_v15 = vmul.f32 0.5, %v1128_v3 }
 0x21d   :  { %v1198_v36 = vmul.f32 2.0, %v1190_v12  ;;  %v1222_v25 = vmul.f32 -2.5052108e-08, %v3604_v55  ;;  %v1191_v63 = vsub.f32 %v1127_v39, %v1183_v18  ;;  %v1300_v23 = vmul.f32 %v1204_v13, %v3556_v29 }
 0x21e   :  { %v1284_v32 = vmul.f32 %v1276_v59, %v3563_v7  ;;  %v1223_v28 = vmul.f32 -2.5052108e-08, %v3606_v62  ;;  %v1160_v60 = vsub.f32 %v1144_v0, %v1152_v20  ;;  %v3613_v9 = vmul.f32 %v1205_v11, %v3559_v41 }
 0x21f   :  { %v1230_v43 = vadd.f32 2.7557319e-06, %v1222_v25  ;;  %v1199_v10 = vmul.f32 2.0, %v1191_v63  ;;  %v1176_v61 = vfloor.f32 %v1168_v15  ;;  %v1306_v1 = vmul.f32 %v1298_v21, %v1290_v4 }
 0x220   :  { %v1292_v16 = vadd.f32 1.0, %v1284_v32  ;;  %v3615_v5 = vmul.f32 %v1160_v60, %v1160_v60  ;;  %v1121_v52 = vadd.f32 0.5, %v1113_v38  ;;  %v1206_v39 = vsub.f32 1.0, %v1198_v36 }
 0x221   :  { %v1238_v58 = vmul.f32 %v1230_v43, %v3604_v55  ;;  %v1231_v7 = vadd.f32 2.7557319e-06, %v1223_v28  ;;  %v1184_v57 = vmul.f32 2.0, %v1176_v61  ;;  %v1207_v29 = vsub.f32 1.0, %v1199_v10 }
 0x222   :  { %v1224_v13 = vmul.f32 -2.5052108e-08, %v3615_v5  ;;  %v1129_v34 = vfloor.f32 %v1121_v52  ;;  %v1235_v41 = vmul.f32 %v3576_v49, %v3553_v17  ;;  %v1308_v11 = vmul.f32 %v1300_v23, %v1292_v16 }
 0x223   :  { %v1246_v22 = vadd.f32 -0.0001984127, %v1238_v58  ;;  %v1192_v26 = vsub.f32 %v1128_v3, %v1184_v57  ;;  %v1237_v21 = vmul.f32 %v1229_v48, %v3573_v14  ;;  %v1356_v49 = vand.u32 4294901760, %v1306_v1 }
 0x224   :  { %v1232_v27 = vadd.f32 2.7557319e-06, %v1224_v13  ;;  %v1137_v33 = vmul.f32 3.140625, %v1129_v34  ;;  %v1153_v53 = vmul.f32 0.0009676536, %v1129_v34  ;;  %v1169_v8 = vmul.f32 0.5, %v1129_v34 }
 0x225   :  { %v1254_v37 = vmul.f32 %v1246_v22, %v3604_v55  ;;  %v1200_v2 = vmul.f32 2.0, %v1192_v26  ;;  %v1243_v50 = vadd.f32 -0.0001984127, %v1235_v41  ;;  %v1245_v30 = vadd.f32 -0.0001984127, %v1237_v21 }
 0x226   :  { %v1240_v38 = vmul.f32 %v1232_v27, %v3615_v5  ;;  %v1145_v44 = vsub.f32 %v3591_v56, %v1137_v33  ;;  %v1177_v24 = vfloor.f32 %v1169_v8  ;;  %v1360_v59 = vand.u32 4294901760, %v1308_v11 }
 0x227   :  { %v1262_v46 = vadd.f32 0.008333334, %v1254_v37  ;;  %v1208_v12 = vsub.f32 1.0, %v1200_v2  ;;  %v1251_v3 = vmul.f32 %v1243_v50, %v3553_v17  ;;  %v1253_v48 = vmul.f32 %v1245_v30, %v3573_v14 }
 0x228   :  { %v1248_v18 = vadd.f32 -0.0001984127, %v1240_v38  ;;  %v3627_v20 = vsub.f32 %v1145_v44, %v1153_v53  ;;  %v1185_v4 = vmul.f32 2.0, %v1177_v24  ;;  %v1302_v36 = vmul.f32 %v1206_v39, %v3597_v45 }
 0x229   :  { %v1270_v0 = vmul.f32 %v1262_v46, %v3604_v55  ;;  %v1259_v25 = vadd.f32 0.008333334, %v1251_v3  ;;  %v1261_v63 = vadd.f32 0.008333334, %v1253_v48  ;;  %v3631_v56 = vmul.f32 %v1207_v29, %v1159_v54 }
 0x22a   :  { %v1256_v15 = vmul.f32 %v1248_v18, %v3615_v5  ;;  %v3636_v32 = vmul.f32 %v3627_v20, %v3627_v20  ;;  %v3638_v23 = vpack.c.bf16 %v1360_v59, %v1356_v49  ;;  %v3642_v61 = vsub.f32 %v1306_v1, %v1356_v49 }
 0x22b   :  { %v1278_v28 = vadd.f32 -0.16666667, %v1270_v0  ;;  %v1267_v43 = vmul.f32 %v1259_v25, %v3553_v17  ;;  %v1269_v10 = vmul.f32 %v1261_v63, %v3573_v14  ;;  %v1304_v16 = vmul.f32 %v1208_v12, %v1160_v60 }
 0x22c   :  { %v1264_v45 = vadd.f32 0.008333334, %v1256_v15  ;;  %v1193_v52 = vsub.f32 %v1129_v34, %v1185_v4  ;;  %v1225_v54 = vmul.f32 -2.5052108e-08, %v3636_v32  ;;  %v1239_v29 = vmul.f32 %v1231_v7, %v3606_v62 }
 0x22d   :  { %v1286_v39 = vmul.f32 %v1278_v28, %v3604_v55  ;;  %v1275_v58 = vadd.f32 -0.16666667, %v1267_v43  ;;  %v1277_v57 = vadd.f32 -0.16666667, %v1269_v10  ;;  %v3648_v22 = vsub.f32 %v1308_v11, %v1360_v59 }
 0x22e   :  { %v1272_v13 = vmul.f32 %v1264_v45, %v3615_v5  ;;  %v1233_v41 = vadd.f32 2.7557319e-06, %v1225_v54  ;;  %v1479_v26 = vand.u32 4294901760, %v3642_v61  ;;  %v1247_v34 = vadd.f32 -0.0001984127, %v1239_v29 }
 0x22f   :  { %v1294_v1 = vadd.f32 1.0, %v1286_v39  ;;  %v1283_v21 = vmul.f32 %v1275_v58, %v3553_v17  ;;  %v1285_v60 = vmul.f32 %v1277_v57, %v3573_v14  ;;  %v1201_v33 = vmul.f32 2.0, %v1193_v52 }
 0x230   :  { %v1280_v27 = vadd.f32 -0.16666667, %v1272_v13  ;;  %v1241_v55 = vmul.f32 %v1233_v41, %v3636_v32  ;;  %v1480_v53 = vsub.f32 %v3642_v61, %v1479_v26  ;;  %v1255_v11 = vmul.f32 %v1247_v34, %v3606_v62 }
 0x231   :  { %v1310_v7 = vmul.f32 %v1302_v36, %v1294_v1  ;;  %v1291_v8 = vadd.f32 1.0, %v1283_v21  ;;  %v1293_v37 = vadd.f32 1.0, %v1285_v60  ;;  %v1491_v17 = vand.u32 4294901760, %v3648_v22 }
 0x232   :  { %v1288_v2 = vmul.f32 %v1280_v27, %v3615_v5  ;;  %v1249_v50 = vadd.f32 -0.0001984127, %v1241_v55  ;;  %v1481_v30 = vand.u32 4294901760, %v1480_v53  ;;  %v1263_v44 = vadd.f32 0.008333334, %v1255_v11  ;;  %v1317_v27 = vld [vmem:[%s3967_s5 + $0x18] sm:$0xff] }
 0x233   :  { %v1307_v14 = vmul.f32 %v3585_v31, %v1291_v8  ;;  %v1309_v38 = vmul.f32 %v3613_v9, %v1293_v37  ;;  %v1364_v24 = vand.u32 4294901760, %v1310_v7  ;;  %v1492_v12 = vsub.f32 %v3648_v22, %v1491_v17 }
 0x234   :  { %v1296_v49 = vadd.f32 1.0, %v1288_v2  ;;  %v1257_v46 = vmul.f32 %v1249_v50, %v3636_v32  ;;  %v2890_v3 = vpack.c.bf16 %v3648_v22, %v3642_v61  ;;  %v1271_v18 = vmul.f32 %v1263_v44, %v3606_v62  ;;  %v1330_v22 = vpop.permute.xlu1 %1329 }
 0x235   :  { %v1354_v48 = vand.u32 4294901760, %v1307_v14  ;;  %v1358_v5 = vand.u32 4294901760, %v1309_v38  ;;  %v3665_v4 = vsub.f32 %v1310_v7, %v1364_v24  ;;  %v1493_v0 = vand.u32 4294901760, %v1492_v12 }
 0x236   :  { %v1312_v59 = vmul.f32 %v1304_v16, %v1296_v49  ;;  %v1265_v31 = vadd.f32 0.008333334, %v1257_v46  ;;  %v3667_v9 = vpack.c.bf16 %v1491_v17, %v1479_v26  ;;  %v1279_v15 = vadd.f32 -0.16666667, %v1271_v18 }
 0x237   :  { %v3669_v36 = vpack.c.bf16 %v1358_v5, %v1354_v48  ;;  %v3671_v25 = vsub.f32 %v1307_v14, %v1354_v48  ;;  %v3673_v63 = vsub.f32 %v1309_v38, %v1358_v5  ;;  %v2882_v10 = vpack.c.bf16 %v1493_v0, %v1481_v30 }
 0x238   :  { %v1273_v28 = vmul.f32 %v1265_v31, %v3636_v32  ;;  %v1368_v43 = vand.u32 4294901760, %v1312_v59  ;;  %v1503_v45 = vand.u32 4294901760, %v3665_v4  ;;  %v1287_v16 = vmul.f32 %v1279_v15, %v3606_v62 }
 0x239   :  { %2873 = vmatprep.subr.bf16.mxu1 %v3669_v36  ;;  %v1473_v52 = vand.u32 4294901760, %v3671_v25  ;;  %v1485_v54 = vand.u32 4294901760, %v3673_v63  ;;  %v2888_v39 = vpack.c.bf16 %v3673_v63, %v3671_v25  ;;  %v1209_v58 = vsub.f32 1.0, %v1201_v33 }
 0x23a   :  { %2875 = vmatpush1.bf16.msra.mxu1 %v3638_v23  ;;  %v1281_v57 = vadd.f32 -0.16666667, %v1273_v28  ;;  %v3684_v29 = vpack.c.bf16 %v1368_v43, %v1364_v24  ;;  %v3686_v13 = vsub.f32 %v1312_v59, %v1368_v43  ;;  %v1295_v41 = vadd.f32 1.0, %v1287_v16 }
 0x23b   :  { %v1474_v26 = vsub.f32 %v3671_v25, %v1473_v52  ;;  %v1486_v62 = vsub.f32 %v3673_v63, %v1485_v54  ;;  %v3690_v1 = vpack.c.bf16 %v1485_v54, %v1473_v52  ;;  %v1504_v60 = vsub.f32 %v3665_v4, %v1503_v45 }
 0x23c   :  { %v1289_v21 = vmul.f32 %v1281_v57, %v3636_v32  ;;  %v1515_v34 = vand.u32 4294901760, %v3686_v13  ;;  %v2894_v33 = vpack.c.bf16 %v3686_v13, %v3665_v4  ;;  %v1311_v55 = vmul.f32 %v3631_v56, %v1295_v41 }
 0x23d   :  { %v1475_v53 = vand.u32 4294901760, %v1474_v26  ;;  %v1487_v7 = vand.u32 4294901760, %v1486_v62  ;;  %v3702_v8 = vand.u32 4294901760, %v3582_v51  ;;  %v1305_v32 = vmul.f32 %v1209_v58, %v3627_v20 }
 0x23e   :  { %v1297_v37 = vadd.f32 1.0, %v1289_v21  ;;  %v1516_v11 = vsub.f32 %v3686_v13, %v1515_v34  ;;  %v3706_v2 = vpack.c.bf16 %v1515_v34, %v1503_v45  ;;  %v1362_v50 = vand.u32 4294901760, %v1311_v55 }
 0x23f   :  { %v2880_v30 = vpack.c.bf16 %v1487_v7, %v1475_v53  ;;  %v1352_v17 = vsel %vm403_vm0, %v1317_v27, 0  ;;  %v1505_v38 = vand.u32 4294901760, %v1504_v60  ;;  %v1430_v24 = vsub.f32 %v3537_v6, %v1429_v35 }
 0x240   :  { %v1313_v14 = vmul.f32 %v1305_v32, %v1297_v37  ;;  %v1517_v44 = vand.u32 4294901760, %v1516_v11  ;;  %v1496_v56 = vsub.f32 %v1311_v55, %v1362_v50  ;;  %v1440_v49 = vand.u32 4294901760, %v3566_v47 }
 0x241   :  { %v3715_v20 = vsub.f32 %v3582_v51, %v3702_v8  ;;  %v3717_v48 = vand.u32 4294901760, %v1352_v17  ;;  %v1431_v59 = vand.u32 4294901760, %v1430_v24 }
 0x242   :  { %v1366_v46 = vand.u32 4294901760, %v1313_v14  ;;  %v2886_v12 = vpack.c.bf16 %v1517_v44, %v1505_v38  ;;  %v1497_v5 = vand.u32 4294901760, %v1496_v56  ;;  %v1441_v31 = vsub.f32 %v3566_v47, %v1440_v49 }
 0x243   :  { %v1451_v0 = vand.u32 4294901760, %v3715_v20  ;;  %v1461_v28 = vsub.f32 %v1352_v17, %v3717_v48 }
 0x244   :  { %v3719_v18 = vpack.c.bf16 %v1366_v46, %v1362_v50  ;;  %v1508_v4 = vsub.f32 %v1313_v14, %v1366_v46  ;;  %v1498_v15 = vsub.f32 %v1496_v56, %v1497_v5  ;;  %v1442_v52 = vand.u32 4294901760, %v1441_v31 }
 0x245   :  { %v1452_v57 = vsub.f32 %v3715_v20, %v1451_v0  ;;  %v1462_v13 = vand.u32 4294901760, %v1461_v28 }
 0x246   :  { %2877 = vmatprep.subr.bf16.mxu1 %v3719_v18  ;;  %v1509_v51 = vand.u32 4294901760, %v1508_v4  ;;  %v2892_v43 = vpack.c.bf16 %v1508_v4, %v1496_v56  ;;  %v1499_v54 = vand.u32 4294901760, %v1498_v15 }
 0x247   :  { %2879 = vmatpush1.bf16.msra.mxu1 %v3684_v29  ;;  %v1453_v26 = vand.u32 4294901760, %v1452_v57  ;;  %v1463_v62 = vsub.f32 %v1461_v28, %v1462_v13 }
 0x248   :  { %2881 = vmatprep.subr.bf16.mxu1 %v2880_v30  ;;  %v1510_v45 = vsub.f32 %v1508_v4, %v1509_v51  ;;  %v2908_v16 = vpack.c.bf16 %v1509_v51, %v1497_v5 }
 0x249   :  { %v1464_v21 = vand.u32 4294901760, %v1463_v62 }
 0x24a   :  { %1432 = vmatmul.mubr.f32.vlgmr.msra.gmra.mrb[8].mxu1 %v1431_v59  ;;  %v1511_v58 = vand.u32 4294901760, %v1510_v45 }
 0x24b   :  { %2883 = vmatpush1.bf16.msra.mxu1 %v2882_v10  ;;  %1437 = vmatprep.mubr.f32.mxu1 %v3112_v19 }
 0x24c   :  { %v2884_v41 = vpack.c.bf16 %v1511_v58, %v1499_v54 }
 0x24e   :  { %1443 = vmatmul.mubr.f32.gmra.mrb[10].mxu1 %v1442_v52  ;;  %2885 = vmatprep.subr.bf16.mxu1 %v2884_v41 }
 0x24f   :  { %2887 = vmatpush1.bf16.msra.mxu1 %v2886_v12  ;;  %1448 = vmatprep.mubr.f32.mxu1 %v3112_v19 }
 0x250   :  { %2889 = vmatprep.subr.bf16.mxu1 %v2888_v39 }
 0x252   :  { %1454 = vmatmul.mubr.f32.gmra.mrb[12].mxu1 %v1453_v26 }
 0x253   :  { %1459 = vmatprep.mubr.f32.mxu1 %v3112_v19 }
 0x256   :  { %1465 = vmatmul.mubr.f32.gmra.mrb[14].mxu1 %v1464_v21 }
 0x257   :  { %1575 = vmatprep.mubr.f32.mxu1 %v3112_v19 }
 0x25a   :  { %1577 = vmatmul.mubr.f32.vlgmr.msra.gmra.mrb[8].mxu1 %v3531_v40 }
 0x25b   :  { %2891 = vmatpush1.bf16.msra.mxu1 %v2890_v3  ;;  %1582 = vmatprep.mubr.f32.mxu1 %v3112_v19 }
 0x25c   :  { %2893 = vmatprep.subr.bf16.mxu1 %v2892_v43 }
 0x25e   :  { %1584 = vmatmul.mubr.f32.gmra.mrb[10].mxu1 %v3545_v42 }
 0x25f   :  { %2895 = vmatpush1.bf16.msra.mxu1 %v2894_v33  ;;  %1589 = vmatprep.mubr.f32.mxu1 %v3112_v19 }
 0x260   :  { %2897 = vmatprep.subr.bf16.mxu1 %v3669_v36 }
 0x262   :  { %1591 = vmatmul.mubr.f32.gmra.mrb[12].mxu1 %v3702_v8 }
 0x263   :  { %1596 = vmatprep.mubr.f32.mxu1 %v3112_v19 }
 0x266   :  { %1598 = vmatmul.mubr.f32.gmra.mrb[14].mxu1 %v3717_v48 }
 0x267   :  { %1684 = vmatprep.mubr.f32.mxu1 %v3112_v19 }
 0x26a   :  { %1687 = vmatmul.mubr.f32.vlgmr.msra.gmra.mrb[8].mxu1 %v3537_v6  ;;  %v1325_v6 = vpop.permute.xlu0 %1324 }
 0x26b   :  { %2899 = vmatpush1.bf16.msra.mxu1 %v3638_v23  ;;  %1692 = vmatprep.mubr.f32.mxu1 %v3112_v19 }
 0x26c   :  { %2901 = vmatprep.subr.bf16.mxu1 %v3719_v18 }
 0x26e   :  { %1695 = vmatmul.mubr.f32.gmra.mrb[10].mxu1 %v3566_v47  ;;  %v1335_v30 = vpop.permute.xlu0 %1334 }
 0x26f   :  { %2903 = vmatpush1.bf16.msra.mxu1 %v3684_v29  ;;  %1700 = vmatprep.mubr.f32.mxu1 %v3112_v19 }
 0x270   :  { %2905 = vmatprep.subr.bf16.mxu1 %v3690_v1 }
 0x272   :  { %1703 = vmatmul.mubr.f32.gmra.mrb[12].mxu1 %v3715_v20 }
 0x273   :  { %1708 = vmatprep.mubr.f32.mxu1 %v3112_v19 }
 0x276   :  { %1711 = vmatmul.mubr.f32.gmra.mrb[14].mxu1 %v1461_v28 }
 0x277   :  { %1789 = vmatprep.mubr.f32.mxu1 %v3112_v19 }
 0x27a   :  { %1793 = vmatmul.mubr.f32.vlgmr.msra.gmra.mrb[8].mxu1 %v1429_v35 }
 0x27b   :  { %2907 = vmatpush1.bf16.msra.mxu1 %v3667_v9  ;;  %1798 = vmatprep.mubr.f32.mxu1 %v3112_v19 }
 0x27c   :  { %2909 = vmatprep.subr.bf16.mxu1 %v2908_v16 }
 0x27e   :  { %1802 = vmatmul.mubr.f32.gmra.mrb[10].mxu1 %v1440_v49 }
 0x27f   :  { %2911 = vmatpush1.bf16.msra.mxu1 %v3706_v2  ;;  %1807 = vmatprep.mubr.f32.mxu1 %v3112_v19 }
 0x280   :  { %2913 = vmatprep.subr.bf16.mxu1 %v3669_v36 }
 0x282   :  { %1811 = vmatmul.mubr.f32.gmra.mrb[12].mxu1 %v1451_v0 }
 0x283   :  { %1816 = vmatprep.mubr.f32.mxu1 %v3112_v19 }
 0x286   :  { %1820 = vmatmul.mubr.f32.gmra.mrb[14].mxu1 %v1462_v13 }
 0x287   :  { %1914 = vmatprep.mubr.f32.mxu1 %v3112_v19 }
 0x28a   :  { %1916 = vmatmul.mubr.f32.vlgmr.msra.gmra.mrb[8].mxu1 %v3531_v40 }
 0x28b   :  { %2915 = vmatpush1.bf16.msra.mxu1 %v3638_v23  ;;  %1921 = vmatprep.mubr.f32.mxu1 %v3112_v19 }
 0x28c   :  { %2917 = vmatprep.subr.bf16.mxu1 %v3719_v18 }
 0x28e   :  { %1923 = vmatmul.mubr.f32.gmra.mrb[10].mxu1 %v3545_v42 }
 0x28f   :  { %2919 = vmatpush1.bf16.msra.mxu1 %v3684_v29  ;;  %1928 = vmatprep.mubr.f32.mxu1 %v3112_v19 }
 0x292   :  { %1930 = vmatmul.mubr.f32.gmra.mrb[12].mxu1 %v3702_v8 }
 0x293   :  { %1935 = vmatprep.mubr.f32.mxu1 %v3112_v19 }
 0x296   :  { %1937 = vmatmul.mubr.f32.gmra.mrb[14].mxu1 %v3717_v48 }
 0x297   :  { %2015 = vmatprep.mubr.f32.mxu1 %v3112_v19 }
 0x29a   :  { %2017 = vmatmul.mubr.f32.vlgmr.msra.gmra.mrb[8].mxu1 %v3531_v40 }
 0x29b   :  { %2022 = vmatprep.mubr.f32.mxu1 %v3112_v19 }
 0x29e   :  { %2024 = vmatmul.mubr.f32.gmra.mrb[10].mxu1 %v3545_v42  ;;  %v2252_v42 = vld [vmem:[%s3969_s7] sm:$0x7]  ;;  %s3113_s7 = smov [#allocation2]  }
 0x29f   :  { %2029 = vmatprep.mubr.f32.mxu1 %v3112_v19  ;;  %v3793_v29 = vsel %vm403_vm0, %v2252_v42, 0  ;;  %s2816_s12 = sshll.u32 %s3113_s7, 4  ;;  %s2817_s12 = int_to_ptr.vmem [resolvable:$true] %s2816_s12 }
 0x2a0   :  { %v3796_v32 = vand.u32 4294901760, %v3793_v29  ;;  %s3086_s13 = scalar_lea.vmem %s2817_s12, 128  ;;  %p3091_p1 = scmp.lt.s32.totalorder %s2817_s12, %s2817_s12 }
 0x2a1   :  { %p3087_p0 = scmp.ne.s32.totalorder %s2817_s12, %s3086_s13  ;;  %p3092_p2 = scmp.lt.s32.totalorder %s3086_s13, %s3086_s13 }
 0x2a2   :  { %2031 = vmatmul.mubr.f32.gmra.mrb[12].mxu1 %v3702_v8 }
 0x2a3   :  { %2036 = vmatprep.mubr.f32.mxu1 %v3112_v19  ;;  %p3093_p3 = por %p3092_p2, %p3091_p1 }
 0x2a5   :  { %p3094_p4 = pnand %p3093_p3, %p3087_p0 }
 0x2a6   :  { %2038 = vmatmul.mubr.f32.gmra.mrb[14].mxu1 %v3717_v48 }
 0x2a7   :  { %2334 = vmatprep.mubr.f32.mxu1 %v3112_v19 }
 0x36d   :  { %v2018_v35 = vpop.f32.mrb[8].mxu1 }
 0x36e   :  { %v2984_v47 = vadd.f32 %v2018_v35, %v1325_v6  ;;  %v2020_v23 = vpop.f32.mrb[9].mxu1 }
 0x36f   :  { %v2985_v61 = vadd.f32 %v2020_v23, %v1325_v6 }
 0x370   :  { %v2044_v40 = vmul.f32 0.31830987, %v2984_v47 }
 0x371   :  { %v2045_v3 = vmul.f32 0.31830987, %v2985_v61  ;;  %v2025_v9 = vpop.f32.mrb[10].mxu1 }
 0x372   :  { %v2052_v36 = vadd.f32 0.5, %v2044_v40  ;;  %v2986_v25 = vadd.f32 %v2025_v9, %v1330_v22  ;;  %v2027_v63 = vpop.f32.mrb[11].mxu1 }
 0x373   :  { %v2053_v10 = vadd.f32 0.5, %v2045_v3  ;;  %v2987_v39 = vadd.f32 %v2027_v63, %v1330_v22 }
 0x374   :  { %v2060_v1 = vfloor.f32 %v2052_v36  ;;  %v2046_v60 = vmul.f32 0.31830987, %v2986_v25 }
 0x375   :  { %v2061_v34 = vfloor.f32 %v2053_v10  ;;  %v2047_v27 = vmul.f32 0.31830987, %v2987_v39  ;;  %v2032_v33 = vpop.f32.mrb[12].mxu1 }
 0x376   :  { %v2068_v55 = vmul.f32 3.140625, %v2060_v1  ;;  %v2100_v53 = vmul.f32 0.5, %v2060_v1  ;;  %v2054_v7 = vadd.f32 0.5, %v2046_v60  ;;  %v2034_v8 = vpop.f32.mrb[13].mxu1  ;;  %v2084_v37 = vmul.f32 0.0009676536, %v2060_v1 }
 0x377   :  { %v2069_v11 = vmul.f32 3.140625, %v2061_v34  ;;  %v2101_v2 = vmul.f32 0.5, %v2061_v34  ;;  %v2055_v50 = vadd.f32 0.5, %v2047_v27  ;;  %v2085_v38 = vmul.f32 0.0009676536, %v2061_v34  ;;  %v1340_v27 = vpop.permute.xlu1 %1339 }
 0x378   :  { %v2076_v17 = vsub.f32 %v2984_v47, %v2068_v55  ;;  %v2108_v14 = vfloor.f32 %v2100_v53  ;;  %v2062_v44 = vfloor.f32 %v2054_v7  ;;  %v3798_v20 = vadd.f32 %v2032_v33, %v1335_v30 }
 0x379   :  { %v2077_v56 = vsub.f32 %v2985_v61, %v2069_v11  ;;  %v2109_v24 = vfloor.f32 %v2101_v2  ;;  %v2063_v49 = vfloor.f32 %v2055_v50  ;;  %v2039_v46 = vpop.f32.mrb[14].mxu1  ;;  %v2989_v40 = vadd.f32 %v2034_v8, %v1335_v30 }
 0x37a   :  { %v2092_v12 = vsub.f32 %v2076_v17, %v2084_v37  ;;  %v2116_v48 = vmul.f32 2.0, %v2108_v14  ;;  %v2070_v5 = vmul.f32 3.140625, %v2062_v44  ;;  %v2086_v18 = vmul.f32 0.0009676536, %v2062_v44  ;;  %v2041_v4 = vpop.f32.mrb[15].mxu1 }
 0x37b   :  { %v2093_v59 = vsub.f32 %v2077_v56, %v2085_v38  ;;  %v2117_v31 = vmul.f32 2.0, %v2109_v24  ;;  %v2102_v0 = vmul.f32 0.5, %v2062_v44  ;;  %v2071_v15 = vmul.f32 3.140625, %v2063_v49 }
 0x37c   :  { %v2124_v51 = vsub.f32 %v2060_v1, %v2116_v48  ;;  %v3800_v28 = vmul.f32 %v2092_v12, %v2092_v12  ;;  %v2078_v43 = vsub.f32 %v2986_v25, %v2070_v5  ;;  %v2087_v45 = vmul.f32 0.0009676536, %v2063_v49 }
 0x37d   :  { %v2125_v16 = vsub.f32 %v2061_v34, %v2117_v31  ;;  %v3802_v52 = vmul.f32 %v2093_v59, %v2093_v59  ;;  %v2110_v54 = vfloor.f32 %v2102_v0  ;;  %v2079_v58 = vsub.f32 %v2987_v39, %v2071_v15 }
 0x37e   :  { %v2132_v57 = vmul.f32 2.0, %v2124_v51  ;;  %v2156_v13 = vmul.f32 -2.5052108e-08, %v3800_v28  ;;  %v3805_v41 = vsub.f32 %v2078_v43, %v2086_v18  ;;  %v2103_v26 = vmul.f32 0.5, %v2063_v49 }
 0x37f   :  { %v2133_v62 = vmul.f32 2.0, %v2125_v16  ;;  %v2157_v21 = vmul.f32 -2.5052108e-08, %v3802_v52  ;;  %v2118_v6 = vmul.f32 2.0, %v2110_v54  ;;  %v3808_v35 = vsub.f32 %v2079_v58, %v2087_v45 }
 0x380   :  { %v2164_v47 = vadd.f32 2.7557319e-06, %v2156_v13  ;;  %v3812_v23 = vmul.f32 %v3805_v41, %v3805_v41  ;;  %v2111_v61 = vfloor.f32 %v2103_v26  ;;  %v2140_v42 = vsub.f32 1.0, %v2132_v57 }
 0x381   :  { %v2141_v22 = vsub.f32 1.0, %v2133_v62  ;;  %v2126_v3 = vsub.f32 %v2062_v44, %v2118_v6  ;;  %v3816_v9 = vmul.f32 %v3808_v35, %v3808_v35  ;;  %v3819_v25 = vadd.f32 2.7557319e-06, %v2157_v21 }
 0x382   :  { %v2172_v36 = vmul.f32 %v2164_v47, %v3800_v28  ;;  %v2158_v63 = vmul.f32 -2.5052108e-08, %v3812_v23  ;;  %v2119_v10 = vmul.f32 2.0, %v2111_v61  ;;  %v2048_v60 = vmul.f32 0.31830987, %v3798_v20 }
 0x383   :  { %v3822_v39 = vmul.f32 2.0, %v2126_v3  ;;  %v2159_v1 = vmul.f32 -2.5052108e-08, %v3816_v9  ;;  %v3828_v34 = vsub.f32 %v3793_v29, %v3796_v32  ;;  %v2049_v7 = vmul.f32 0.31830987, %v2989_v40 }
 0x384   :  { %v2180_v33 = vadd.f32 -0.0001984127, %v2172_v36  ;;  %v2166_v55 = vadd.f32 2.7557319e-06, %v2158_v63  ;;  %v2127_v53 = vsub.f32 %v2063_v49, %v2119_v10  ;;  %v2236_v8 = vmul.f32 %v2140_v42, %v2092_v12 }
 0x385   :  { %v3830_v37 = vmul.f32 %v2141_v22, %v2093_v59  ;;  %v2056_v11 = vadd.f32 0.5, %v2048_v60  ;;  %v2990_v2 = vadd.f32 %v2039_v46, %v1340_v27  ;;  %v2057_v14 = vadd.f32 0.5, %v2049_v7 }
 0x386   :  { %v2188_v50 = vmul.f32 %v2180_v33, %v3800_v28  ;;  %v2174_v30 = vmul.f32 %v2166_v55, %v3812_v23  ;;  %v2135_v17 = vmul.f32 2.0, %v2127_v53  ;;  %v2142_v38 = vsub.f32 1.0, %v3822_v39 }
 0x387   :  { %v3835_v29 = vadd.f32 2.7557319e-06, %v2159_v1  ;;  %v2064_v44 = vfloor.f32 %v2056_v11  ;;  %v2050_v56 = vmul.f32 0.31830987, %v2990_v2  ;;  %v2065_v48 = vfloor.f32 %v2057_v14 }
 0x388   :  { %v2196_v24 = vadd.f32 0.008333334, %v2188_v50  ;;  %v2182_v49 = vadd.f32 -0.0001984127, %v2174_v30  ;;  %v3837_v12 = vadd.f32 %v2041_v4, %v1340_v27  ;;  %v2143_v5 = vsub.f32 1.0, %v2135_v17 }
 0x389   :  { %v2072_v18 = vmul.f32 3.140625, %v2064_v44  ;;  %v2104_v46 = vmul.f32 0.5, %v2064_v44  ;;  %v2058_v59 = vadd.f32 0.5, %v2050_v56  ;;  %v2088_v15 = vmul.f32 0.0009676536, %v2064_v44 }
 0x38a   :  { %v2204_v31 = vmul.f32 %v2196_v24, %v3800_v28  ;;  %v2190_v0 = vmul.f32 %v2182_v49, %v3812_v23  ;;  %v2073_v51 = vmul.f32 3.140625, %v2065_v48  ;;  %v2089_v16 = vmul.f32 0.0009676536, %v2065_v48 }
 0x38b   :  { %v2080_v43 = vsub.f32 %v3798_v20, %v2072_v18  ;;  %v2112_v45 = vfloor.f32 %v2104_v46  ;;  %v2105_v54 = vmul.f32 0.5, %v2065_v48  ;;  %v2066_v4 = vfloor.f32 %v2058_v59 }
 0x38c   :  { %v2212_v58 = vadd.f32 -0.16666667, %v2204_v31  ;;  %v2198_v57 = vadd.f32 0.008333334, %v2190_v0  ;;  %v2081_v13 = vsub.f32 %v2989_v40, %v2073_v51  ;;  %v2051_v6 = vmul.f32 0.31830987, %v3837_v12 }
 0x38d   :  { %v3842_v26 = vsub.f32 %v2080_v43, %v2088_v15  ;;  %v2120_v62 = vmul.f32 2.0, %v2112_v45  ;;  %v2113_v21 = vfloor.f32 %v2105_v54  ;;  %v2074_v22 = vmul.f32 3.140625, %v2066_v4 }
 0x38e   :  { %v2220_v47 = vmul.f32 %v2212_v58, %v3800_v28  ;;  %v2206_v61 = vmul.f32 %v2198_v57, %v3812_v23  ;;  %v2097_v42 = vsub.f32 %v2081_v13, %v2089_v16  ;;  %v2090_v40 = vmul.f32 0.0009676536, %v2066_v4 }
 0x38f   :  { %v2128_v20 = vsub.f32 %v2064_v44, %v2120_v62  ;;  %v3849_v3 = vmul.f32 %v3842_v26, %v3842_v26  ;;  %v2121_v36 = vmul.f32 2.0, %v2113_v21  ;;  %v2082_v1 = vsub.f32 %v2990_v2, %v2074_v22 }
 0x390   :  { %v2228_v63 = vadd.f32 1.0, %v2220_v47  ;;  %v2214_v10 = vadd.f32 -0.16666667, %v2206_v61  ;;  %v3851_v39 = vmul.f32 %v2097_v42, %v2097_v42  ;;  %v2106_v33 = vmul.f32 0.5, %v2066_v4 }
 0x391   :  { %v2136_v60 = vmul.f32 2.0, %v2128_v20  ;;  %v2160_v27 = vmul.f32 -2.5052108e-08, %v3849_v3  ;;  %v2129_v28 = vsub.f32 %v2065_v48, %v2121_v36  ;;  %v2238_v53 = vmul.f32 %v2142_v38, %v3805_v41 }
 0x392   :  { %v2222_v55 = vmul.f32 %v2214_v10, %v3812_v23  ;;  %v2161_v7 = vmul.f32 -2.5052108e-08, %v3851_v39  ;;  %v2098_v11 = vsub.f32 %v2082_v1, %v2090_v40  ;;  %v3858_v50 = vmul.f32 %v2143_v5, %v3808_v35 }
 0x393   :  { %v2168_v30 = vadd.f32 2.7557319e-06, %v2160_v27  ;;  %v2137_v17 = vmul.f32 2.0, %v2129_v28  ;;  %v2114_v14 = vfloor.f32 %v2106_v33  ;;  %v2244_v44 = vmul.f32 %v2236_v8, %v2228_v63 }
 0x394   :  { %v2230_v2 = vadd.f32 1.0, %v2222_v55  ;;  %v3860_v56 = vmul.f32 %v2098_v11, %v2098_v11  ;;  %v2059_v24 = vadd.f32 0.5, %v2051_v6  ;;  %v2144_v49 = vsub.f32 1.0, %v2136_v60 }
 0x395   :  { %v2176_v48 = vmul.f32 %v2168_v30, %v3849_v3  ;;  %v2169_v23 = vadd.f32 2.7557319e-06, %v2161_v7  ;;  %v2122_v18 = vmul.f32 2.0, %v2114_v14  ;;  %v2145_v41 = vsub.f32 1.0, %v2137_v17 }
 0x396   :  { %v2162_v38 = vmul.f32 -2.5052108e-08, %v3860_v56  ;;  %v2067_v46 = vfloor.f32 %v2059_v24  ;;  %v2173_v35 = vmul.f32 %v3819_v25, %v3802_v52  ;;  %v2246_v5 = vmul.f32 %v2238_v53, %v2230_v2 }
 0x397   :  { %v2184_v59 = vadd.f32 -0.0001984127, %v2176_v48  ;;  %v2130_v31 = vsub.f32 %v2066_v4, %v2122_v18  ;;  %v2175_v8 = vmul.f32 %v3835_v29, %v3816_v9  ;;  %v2264_v62 = vand.u32 4294901760, %v2244_v44 }
 0x398   :  { %v2170_v0 = vadd.f32 2.7557319e-06, %v2162_v38  ;;  %v2075_v15 = vmul.f32 3.140625, %v2067_v46  ;;  %v2091_v51 = vmul.f32 0.0009676536, %v2067_v46  ;;  %v2107_v43 = vmul.f32 0.5, %v2067_v46 }
 0x399   :  { %v2192_v45 = vmul.f32 %v2184_v59, %v3849_v3  ;;  %v2138_v16 = vmul.f32 2.0, %v2130_v31  ;;  %v2181_v54 = vadd.f32 -0.0001984127, %v2173_v35  ;;  %v2183_v58 = vadd.f32 -0.0001984127, %v2175_v8 }
 0x39a   :  { %v2178_v57 = vmul.f32 %v2170_v0, %v3860_v56  ;;  %v2083_v13 = vsub.f32 %v3837_v12, %v2075_v15  ;;  %v2115_v25 = vfloor.f32 %v2107_v43  ;;  %v2268_v20 = vand.u32 4294901760, %v2246_v5 }
 0x39b   :  { %v2200_v21 = vadd.f32 0.008333334, %v2192_v45  ;;  %v2146_v4 = vsub.f32 1.0, %v2138_v16  ;;  %v2189_v6 = vmul.f32 %v2181_v54, %v3802_v52  ;;  %v2191_v29 = vmul.f32 %v2183_v58, %v3816_v9 }
 0x39c   :  { %v2186_v47 = vadd.f32 -0.0001984127, %v2178_v57  ;;  %v3873_v61 = vsub.f32 %v2083_v13, %v2091_v51  ;;  %v2123_v22 = vmul.f32 2.0, %v2115_v25  ;;  %v2240_v40 = vmul.f32 %v2144_v49, %v3842_v26 }
 0x39d   :  { %v2208_v36 = vmul.f32 %v2200_v21, %v3849_v3  ;;  %v2197_v63 = vadd.f32 0.008333334, %v2189_v6  ;;  %v2199_v10 = vadd.f32 0.008333334, %v2191_v29  ;;  %v3877_v12 = vmul.f32 %v2145_v41, %v2097_v42 }
 0x39e   :  { %v2194_v1 = vmul.f32 %v2186_v47, %v3860_v56  ;;  %v3882_v60 = vmul.f32 %v3873_v61, %v3873_v61  ;;  %v3884_v27 = vpack.c.bf16 %v2268_v20, %v2264_v62  ;;  %v3888_v53 = vsub.f32 %v2244_v44, %v2264_v62 }
 0x39f   :  { %v2216_v28 = vadd.f32 -0.16666667, %v2208_v36  ;;  %v2205_v33 = vmul.f32 %v2197_v63, %v3802_v52  ;;  %v2207_v55 = vmul.f32 %v2199_v10, %v3816_v9  ;;  %v2242_v7 = vmul.f32 %v2146_v4, %v2098_v11 }
 0x3a0   :  { %v2202_v26 = vadd.f32 0.008333334, %v2194_v1  ;;  %v2131_v30 = vsub.f32 %v2067_v46, %v2123_v22  ;;  %v2163_v42 = vmul.f32 -2.5052108e-08, %v3882_v60  ;;  %v2177_v24 = vmul.f32 %v2169_v23, %v3851_v39 }
 0x3a1   :  { %v2224_v17 = vmul.f32 %v2216_v28, %v3849_v3  ;;  %v2213_v14 = vadd.f32 -0.16666667, %v2205_v33  ;;  %v2215_v2 = vadd.f32 -0.16666667, %v2207_v55  ;;  %v3894_v18 = vsub.f32 %v2246_v5, %v2268_v20 }
 0x3a2   :  { %v2210_v49 = vmul.f32 %v2202_v26, %v3860_v56  ;;  %v2171_v48 = vadd.f32 2.7557319e-06, %v2163_v42  ;;  %v2354_v41 = vand.u32 4294901760, %v3888_v53  ;;  %v2185_v46 = vadd.f32 -0.0001984127, %v2177_v24 }
 0x3a3   :  { %v2232_v44 = vadd.f32 1.0, %v2224_v17  ;;  %v2221_v38 = vmul.f32 %v2213_v14, %v3802_v52  ;;  %v2223_v11 = vmul.f32 %v2215_v2, %v3816_v9  ;;  %v2139_v59 = vmul.f32 2.0, %v2131_v30 }
 0x3a4   :  { %v2218_v35 = vadd.f32 -0.16666667, %v2210_v49  ;;  %v2179_v3 = vmul.f32 %v2171_v48, %v3882_v60  ;;  %v2355_v31 = vsub.f32 %v3888_v53, %v2354_v41  ;;  %v2193_v5 = vmul.f32 %v2185_v46, %v3851_v39 }
 0x3a5   :  { %v2248_v23 = vmul.f32 %v2240_v40, %v2232_v44  ;;  %v2229_v8 = vadd.f32 1.0, %v2221_v38  ;;  %v2231_v0 = vadd.f32 1.0, %v2223_v11  ;;  %v2366_v52 = vand.u32 4294901760, %v3894_v18 }
 0x3a6   :  { %v2226_v15 = vmul.f32 %v2218_v35, %v3860_v56  ;;  %v2187_v51 = vadd.f32 -0.0001984127, %v2179_v3  ;;  %v2356_v43 = vand.u32 4294901760, %v2355_v31  ;;  %v2201_v16 = vadd.f32 0.008333334, %v2193_v5 }
 0x3a7   :  { %v2245_v9 = vmul.f32 %v3830_v37, %v2229_v8  ;;  %v2247_v45 = vmul.f32 %v3858_v50, %v2231_v0  ;;  %v2272_v54 = vand.u32 4294901760, %v2248_v23  ;;  %v2367_v13 = vsub.f32 %v3894_v18, %v2366_v52 }
 0x3a8   :  { %v2234_v58 = vadd.f32 1.0, %v2226_v15  ;;  %v2195_v57 = vmul.f32 %v2187_v51, %v3882_v60  ;;  %v2938_v25 = vpack.c.bf16 %v3894_v18, %v3888_v53  ;;  %v2209_v21 = vmul.f32 %v2201_v16, %v3851_v39  ;;  %v2257_v18 = vpop.permute.xlu0 %2256 }
 0x3a9   :  { %v2262_v62 = vand.u32 4294901760, %v2245_v9  ;;  %v2266_v56 = vand.u32 4294901760, %v2247_v45  ;;  %v3911_v4 = vsub.f32 %v2248_v23, %v2272_v54  ;;  %v2368_v29 = vand.u32 4294901760, %v2367_v13 }
 0x3aa   :  { %v2250_v6 = vmul.f32 %v2242_v7, %v2234_v58  ;;  %v2203_v37 = vadd.f32 0.008333334, %v2195_v57  ;;  %v3913_v50 = vpack.c.bf16 %v2366_v52, %v2354_v41  ;;  %v2217_v36 = vadd.f32 -0.16666667, %v2209_v21 }
 0x3ab   :  { %v3915_v47 = vpack.c.bf16 %v2266_v56, %v2262_v62  ;;  %v2347_v22 = vsub.f32 %v2245_v9, %v2262_v62  ;;  %v2359_v20 = vsub.f32 %v2247_v45, %v2266_v56  ;;  %v2930_v10 = vpack.c.bf16 %v2368_v29, %v2356_v43 }
 0x3ac   :  { %v2211_v40 = vmul.f32 %v2203_v37, %v3882_v60  ;;  %v2276_v63 = vand.u32 4294901760, %v2250_v6  ;;  %v2378_v1 = vand.u32 4294901760, %v3911_v4  ;;  %v2225_v28 = vmul.f32 %v2217_v36, %v3851_v39 }
 0x3ad   :  { %2921 = vmatprep.subr.bf16.mxu1 %v3915_v47  ;;  %v2348_v33 = vand.u32 4294901760, %v2347_v22  ;;  %v2360_v55 = vand.u32 4294901760, %v2359_v20  ;;  %v2936_v26 = vpack.c.bf16 %v2359_v20, %v2347_v22  ;;  %v2147_v7 = vsub.f32 1.0, %v2139_v59 }
 0x3ae   :  { %2923 = vmatpush1.bf16.msra.mxu1 %v3884_v27  ;;  %v2219_v30 = vadd.f32 -0.16666667, %v2211_v40  ;;  %v3922_v42 = vpack.c.bf16 %v2276_v63, %v2272_v54  ;;  %v2389_v17 = vsub.f32 %v2250_v6, %v2276_v63  ;;  %v2233_v14 = vadd.f32 1.0, %v2225_v28 }
 0x3af   :  { %v2349_v2 = vsub.f32 %v2347_v22, %v2348_v33  ;;  %v2361_v24 = vsub.f32 %v2359_v20, %v2360_v55  ;;  %v2952_v49 = vpack.c.bf16 %v2360_v55, %v2348_v33  ;;  %v2379_v41 = vsub.f32 %v3911_v4, %v2378_v1 }
 0x3b0   :  { %v2227_v48 = vmul.f32 %v2219_v30, %v3882_v60  ;;  %v2390_v44 = vand.u32 4294901760, %v2389_v17  ;;  %v2942_v39 = vpack.c.bf16 %v2389_v17, %v3911_v4  ;;  %v2249_v38 = vmul.f32 %v3877_v12, %v2233_v14 }
 0x3b1   :  { %v2350_v11 = vand.u32 4294901760, %v2349_v2  ;;  %v2362_v46 = vand.u32 4294901760, %v2361_v24  ;;  %v2337_v35 = vand.u32 4294901760, %v3828_v34  ;;  %v2243_v59 = vmul.f32 %v2147_v7, %v3873_v61 }
 0x3b2   :  { %v2235_v3 = vadd.f32 1.0, %v2227_v48  ;;  %v2391_v31 = vsub.f32 %v2389_v17, %v2390_v44  ;;  %v2958_v23 = vpack.c.bf16 %v2390_v44, %v2378_v1  ;;  %v2270_v8 = vand.u32 4294901760, %v2249_v38 }
 0x3b3   :  { %v2928_v0 = vpack.c.bf16 %v2362_v46, %v2350_v11  ;;  %v2380_v60 = vand.u32 4294901760, %v2379_v41  ;;  %v2338_v12 = vsub.f32 %v3828_v34, %v2337_v35 }
 0x3b4   :  { %v2251_v5 = vmul.f32 %v2243_v59, %v2235_v3  ;;  %v2392_v15 = vand.u32 4294901760, %v2391_v31  ;;  %v2371_v51 = vsub.f32 %v2249_v38, %v2270_v8 }
 0x3b5   :  { %2929 = vmatprep.subr.bf16.mxu0 %v2928_v0  ;;  %v2339_v61 = vand.u32 4294901760, %v2338_v12 }
 0x3b6   :  { %v2274_v43 = vand.u32 4294901760, %v2251_v5  ;;  %2931 = vmatpush1.bf16.msra.mxu0 %v2930_v10  ;;  %v2934_v52 = vpack.c.bf16 %v2392_v15, %v2380_v60  ;;  %v2372_v9 = vand.u32 4294901760, %v2371_v51 }
 0x3b8   :  { %v2924_v45 = vpack.c.bf16 %v2274_v43, %v2270_v8  ;;  %v2383_v16 = vsub.f32 %v2251_v5, %v2274_v43  ;;  %v2373_v54 = vsub.f32 %v2371_v51, %v2372_v9 }
 0x3ba   :  { %2925 = vmatprep.subr.bf16.mxu1 %v2924_v45  ;;  %v2384_v58 = vand.u32 4294901760, %v2383_v16  ;;  %v2940_v57 = vpack.c.bf16 %v2383_v16, %v2371_v51  ;;  %v2374_v56 = vand.u32 4294901760, %v2373_v54 }
 0x3bb   :  { %2927 = vmatpush1.bf16.msra.mxu1 %v3922_v42 }
 0x3bc   :  { %v2385_v13 = vsub.f32 %v2383_v16, %v2384_v58  ;;  %v2956_v62 = vpack.c.bf16 %v2384_v58, %v2372_v9 }
 0x3be   :  { %2340 = vmatmul.mubr.f32.vlgmr.msra.gmra.mrb[16].mxu1 %v2339_v61  ;;  %v2386_v21 = vand.u32 4294901760, %v2385_v13 }
 0x3c0   :  { %v2932_v4 = vpack.c.bf16 %v2386_v21, %v2374_v56 }
 0x3c2   :  { %2933 = vmatprep.subr.bf16.mxu0 %v2932_v4 }
 0x3c3   :  { %2935 = vmatpush1.bf16.msra.mxu0 %v2934_v52 }
 0x3c4   :  { %2937 = vmatprep.subr.bf16.mxu0 %v2936_v26 }
 0x3c6   :  { %2452 = vmatmul.mubr.f32.vlgmr.msra.gmra.mrb[8].mxu0 %v3796_v32 }
 0x3c7   :  { %2939 = vmatpush1.bf16.msra.mxu0 %v2938_v25  ;;  %2538 = vmatprep.mubr.f32.mxu0 %v3112_v19 }
 0x3c8   :  { %2941 = vmatprep.subr.bf16.mxu0 %v2940_v57 }
 0x3cb   :  { %2943 = vmatpush1.bf16.msra.mxu0 %v2942_v39 }
 0x3cc   :  { %2945 = vmatprep.subr.bf16.mxu0 %v3915_v47 }
 0x3ce   :  { %2541 = vmatmul.mubr.f32.vlgmr.msra.gmra.mrb[8].mxu0 %v3828_v34 }
 0x3cf   :  { %2947 = vmatpush1.bf16.msra.mxu0 %v3884_v27  ;;  %2619 = vmatprep.mubr.f32.mxu0 %v3112_v19 }
 0x3d0   :  { %2949 = vmatprep.subr.bf16.mxu0 %v2924_v45 }
 0x3d3   :  { %2951 = vmatpush1.bf16.msra.mxu0 %v3922_v42 }
 0x3d4   :  { %2953 = vmatprep.subr.bf16.mxu0 %v2952_v49 }
 0x3d6   :  { %2623 = vmatmul.mubr.f32.vlgmr.msra.gmra.mrb[8].mxu0 %v2337_v35 }
 0x3d7   :  { %2955 = vmatpush1.bf16.msra.mxu0 %v3913_v50  ;;  %2717 = vmatprep.mubr.f32.mxu0 %v3112_v19 }
 0x3d8   :  { %2957 = vmatprep.subr.bf16.mxu0 %v2956_v62 }
 0x3db   :  { %2959 = vmatpush1.bf16.msra.mxu0 %v2958_v23 }
 0x3dc   :  { %2961 = vmatprep.subr.bf16.mxu0 %v3915_v47 }
 0x3de   :  { %2719 = vmatmul.mubr.f32.vlgmr.msra.gmra.mrb[8].mxu0 %v3796_v32 }
 0x3df   :  { %2963 = vmatpush1.bf16.msra.mxu0 %v3884_v27  ;;  %2797 = vmatprep.mubr.f32.mxu0 %v3112_v19 }
 0x3e0   :  { %2965 = vmatprep.subr.bf16.mxu0 %v2924_v45 }
 0x3e3   :  { %2967 = vmatpush1.bf16.msra.mxu0 %v3922_v42 }
 0x3e6   :  { %2799 = vmatmul.mubr.f32.vlgmr.msra.gmra.mrb[8].mxu0 %v3796_v32 }
 0x491   :  { %v2341_v34 = vpop.f32.mrb[16].mxu1 }
 0x492   :  { %v2343_v53 = vpop.f32.mrb[17].mxu1  ;;  %v2342_v25 = vadd.f32 %v2341_v34, %v2257_v18 }
 0x493   :  { %v2344_v6 = vadd.f32 %v2343_v53, %v2257_v18 }
 0x4b9   :  { %v2800_v37 = vpop.f32.mrb[8].mxu0 }
 0x4ba   :  { %v2993_v29 = vadd.f32 %v2800_v37, %v2342_v25  ;;  %v2802_v50 = vpop.f32.mrb[9].mxu0 }
 0x4bb   :  { %v2995_v47 = vadd.f32 %v2802_v50, %v2344_v6 }
 0x4bd   :  { %v2807_v22 = vcombine.low %v2993_v29, %v2995_v47 }
 0x4bf   :  { %2809 = vst [vmem:[#allocation2] sm:$0x77] %v2807_v22 }
 0x4c0   :  { %3097 = shalt.err (!%p3094_p4)
}
 0x4c1   :  { %s3098_s15 = scalar_lea.hbm %s3971_s9, 128 }
 0x4c2   :  { %p3099_p5 = scmp.ne.s32.totalorder %s3971_s9, %s3098_s15  ;;  %p3102_p6 = scmp.lt.u32.totalorder %s3098_s15, %s3971_s9 }
 0x4c4   :  { %p3104_p7 = pnand %p3102_p6, %p3099_p5 }
 0x4c6   :  { %3107 = shalt.err (!%p3104_p7)
}
 0x4c7   :  { %2819 = dma.vmem_to_hbm [thread:$0]  %s2817_s12, 128, %s3971_s9, [#allocation3]  }
 0x4c8   :  { %3108 = dma.done.wait [#allocation3], 128  }
 0x4c9   :  { %3109 = vsyncadd [#allocation3], 4294967168 }
 0x4ca   :  { %2823 = vsyncpa [#allocation3], 1 }

</bundles_post_ra>
